<compile_context>
chip_gen: v6e
topology: v6e:2x2x1
jax: 0.10.0
libtpu: 0.0.40
codegen_flags: <defaults>
</compile_context>

<pallas_src>
import jax
import jax.numpy as jnp
from jax import lax
from jax.experimental import pallas as pl
from jax.experimental.pallas import tpu as pltpu

_MIB = 1024 * 1024


def _hydra_kernel(q_ref, k_ref, v_ref,
                  wq_ref, wk_ref, wv_ref, wo_ref,
                  bq_ref, bk_ref, bv_ref, bo_ref,
                  out_ref, s_ref):
    """One grid step (b, lq, lk).

    Every step: project + L2-normalise the (Lkt, Bt, E) key/value tile (bf16
    MXU operands, f32 accumulation), reduce kn*v over the tile's token axis
    (leading axis -> plain VPU adds) and accumulate into s_ref (Bt, E).

    Last lk step only: project + normalise the (Lqt, Bt, E) query tile,
    multiply by the accumulated s, out-project, store lane-dense.

    No epsilon in the normalisation: rsqrt(0) = inf -> NaN for all-zero
    projected rows, matching PyTorch's q / q.norm() semantics.
    """
    lk = pl.program_id(2)
    nlk = pl.num_programs(2)

    Lkt, Bt, E = k_ref.shape
    Lqt = q_ref.shape[0]

    @pl.when(lk == 0)
    def _():
        s_ref[...] = jnp.zeros_like(s_ref)

    # ---- k/v reduction contribution (ordered for short live ranges) --------
    k = jnp.dot(k_ref[...].reshape(Lkt * Bt, E).astype(jnp.bfloat16),
                wk_ref[...], preferred_element_type=jnp.float32) + bk_ref[...]
    kn = k * lax.rsqrt(jnp.sum(k * k, axis=-1, keepdims=True))      # k dies
    v = jnp.dot(v_ref[...].reshape(Lkt * Bt, E).astype(jnp.bfloat16),
                wv_ref[...], preferred_element_type=jnp.float32) + bv_ref[...]
    kv = (kn * v).reshape(Lkt, Bt, E)                               # kn, v die
    s_ref[...] += jnp.sum(kv, axis=0)                               # (Bt, E)

    # ---- q / output phase: only once the Lk reduction is complete ----------
    @pl.when(lk == nlk - 1)
    def _():
        q = jnp.dot(q_ref[...].reshape(Lqt * Bt, E).astype(jnp.bfloat16),
                    wq_ref[...], preferred_element_type=jnp.float32) + bq_ref[...]
        qn = q * lax.rsqrt(jnp.sum(q * q, axis=-1, keepdims=True))
        h = qn.reshape(Lqt, Bt, E) * s_ref[...][None, :, :]
        out = jnp.dot(h.reshape(Lqt * Bt, E).astype(jnp.bfloat16),
                      wo_ref[...], preferred_element_type=jnp.float32) + bo_ref[...]
        out_ref[...] = out.reshape(Lqt, Bt, E).astype(out_ref.dtype)


def _tpu_info():
    """Best-effort (physical VMEM bytes, TensorCores per device)."""
    vmem = 64 * _MIB          # conservative default (v7x physical size)
    cores = 1
    try:
        info = pltpu.get_tpu_info()
        vmem = int(getattr(info, "vmem_capacity_bytes", vmem))
    except Exception:
        pass
    try:
        kind = jax.devices()[0].device_kind.lower()
        # v4 / v5p megacore and v7x expose 2 TensorCores per device.
        if ("v4" in kind) or ("v5p" in kind) or ("7" in kind):
            cores = 2
    except Exception:
        pass
    return vmem, cores


def _footprint_bytes(bt, lqt, lkt, E):
    f32, bf16 = 4, 2
    io = 2 * (2 * lqt * bt * E * f32 + 2 * lkt * bt * E * f32)   # q+out, k+v (double-buffered)
    weights = 2 * 4 * E * E * bf16                               # 4 bf16 weights, double-buffered
    biases = 2 * 4 * 8 * max(E, 128) * f32                       # (1,E) blocks pad to (8,128)
    scratch = bt * E * f32
    temps = 4 * max(lqt, lkt) * bt * E * f32 \
        + 2 * max(lqt, lkt) * bt * E * bf16                      # live f32 + bf16 intermediates
    return io + weights + biases + scratch + temps


def _divisors_desc(n, multiple_of=1):
    return [d for d in range(n, 0, -1) if n % d == 0 and d % multiple_of == 0]


def _choose_tiles(b_pad, lq, lk, E, budget, min_parallel_steps, seq_cap=1024):
    """Pick (Bt, Lqt, Lkt).  Hard VMEM budget; fall back to the *smallest*
    configuration (never a non-fitting one).  On multi-core chips prefer
    >= min_parallel_steps parallel grid steps when the budget allows."""
    bt_cands = _divisors_desc(b_pad, multiple_of=8)              # b_pad % 8 == 0
    lqt_cands = [d for d in _divisors_desc(lq) if d <= seq_cap]
    lkt_cands = [d for d in _divisors_desc(lk) if d <= seq_cap]
    min_lqt, min_lkt = lqt_cands[-1], lkt_cands[-1]

    # 1) largest batch tile that fits at minimal sequence tiles.
    bt = next((b for b in bt_cands
               if _footprint_bytes(b, min_lqt, min_lkt, E) <= budget), bt_cands[-1])
    # 2) grow the k/v tile (carries the bulk of the matmul work), then the q tile.
    lkt = next((t for t in lkt_cands
                if _footprint_bytes(bt, min_lqt, t, E) <= budget), min_lkt)
    lqt = next((t for t in lqt_cands
                if _footprint_bytes(bt, lqt_cands[-1], lkt, E) <= budget
                and _footprint_bytes(bt, t, lkt, E) <= budget), min_lqt)

    # 3) multi-core chips: prefer >= 2 parallel steps per core.  Shrink Bt first
    #    (the k/v matmul keeps M = Lkt*Bt large), then Lqt (shrinking it re-runs
    #    the k/v reduction once per extra q tile).
    if min_parallel_steps > 1:
        bt_opts = [b for b in bt_cands if b <= bt]
        lqt_opts = [t for t in lqt_cands if t <= lqt]
        i, j = 0, 0
        while (b_pad // bt_opts[i]) * (lq // lqt_opts[j]) < min_parallel_steps:
            if i + 1 < len(bt_opts):
                i += 1
            elif j + 1 < len(lqt_opts):
                j += 1
            else:
                break
        bt, lqt = bt_opts[i], lqt_opts[j]
    return bt, lqt, lkt


def hydra_attention_pallas(query, key, value, params):
    """query: (Lq, B, E); key/value: (Lk, B, E) — PyTorch (seq, batch, embed)
    layout.  Matches HydraAttention.forward with attn_mask=None,
    key_padding_mask=None, dropout p=0 (the module defaults)."""
    Lq, B, E = query.shape
    Lk = key.shape[0]

    # Pad the batch to a multiple of 8: keeps the (Bt, E) trailing block dims on
    # the (8,128) grid and the in-kernel reshapes layout-free.  Padded columns
    # are batch-independent (they may carry NaN from rsqrt(0)) and are sliced off.
    B_pad = ((B + 7) // 8) * 8
    if B_pad != B:
        pad = [(0, 0), (0, B_pad - B), (0, 0)]
        query, key, value = (jnp.pad(t, pad) for t in (query, key, value))

    vmem_cap, cores = _tpu_info()
    vmem_limit = int(vmem_cap * 0.75)      # headroom below physical VMEM
    budget = int(vmem_limit * 0.85)        # headroom for compiler temporaries / spills
    min_parallel_steps = 2 * cores if cores > 1 else 1

    Bt, Lqt, Lkt = _choose_tiles(B_pad, Lq, Lk, E, budget, min_parallel_steps)
    grid = (B_pad // Bt, Lq // Lqt, Lk // Lkt)

    wq_t, wk_t, wv_t, wo_t = (params[n].astype(jnp.bfloat16)
                              for n in ("wq_t", "wk_t", "wv_t", "wo_t"))
    bq, bk, bv, bo = (params[n].astype(jnp.float32)
                      for n in ("bq", "bk", "bv", "bo"))

    q_spec = pl.BlockSpec((Lqt, Bt, E), lambda b, lq, lk: (lq, b, 0))
    kv_spec = pl.BlockSpec((Lkt, Bt, E), lambda b, lq, lk: (lk, b, 0))
    w_spec = pl.BlockSpec((E, E), lambda b, lq, lk: (0, 0))
    b_spec = pl.BlockSpec((1, E), lambda b, lq, lk: (0, 0))
    out_spec = pl.BlockSpec((Lqt, Bt, E), lambda b, lq, lk: (lq, b, 0))

    out = pl.pallas_call(
        _hydra_kernel,
        out_shape=jax.ShapeDtypeStruct((Lq, B_pad, E), query.dtype),
        grid_spec=pltpu.PrefetchScalarGridSpec(
            num_scalar_prefetch=0,
            grid=grid,
            in_specs=[q_spec, kv_spec, kv_spec,
                      w_spec, w_spec, w_spec, w_spec,
                      b_spec, b_spec, b_spec, b_spec],
            out_specs=out_spec,
            scratch_shapes=[pltpu.VMEM((Bt, E), jnp.float32)],
        ),
        compiler_params=pltpu.CompilerParams(
            dimension_semantics=("parallel", "parallel", "arbitrary"),
            vmem_limit_bytes=vmem_limit,
        ),
    )(query, key, value, wq_t, wk_t, wv_t, wo_t, bq, bk, bv, bo)

    return out[:, :B, :] if B_pad != B else out   # native (Lq, B, E), no transpose


def make_params(embed_dim, key):
    """Deterministic synthetic params matching HydraAttention.__init__ shapes."""
    k1, k2 = jax.random.split(key)
    E = embed_dim
    bound_in = (6.0 / (3 * E + E)) ** 0.5          # xavier_uniform_ on (3E, E)
    in_proj_weight = jax.random.uniform(k1, (3 * E, E), jnp.float32,
                                        -bound_in, bound_in)
    bound_out = (1.0 / E) ** 0.5                   # nn.Linear default bound
    out_proj_weight = jax.random.uniform(k2, (E, E), jnp.float32,
                                         -bound_out, bound_out)
    wq = in_proj_weight[0 * E:1 * E]
    wk = in_proj_weight[1 * E:2 * E]
    wv = in_proj_weight[2 * E:3 * E]
    zeros = jnp.zeros((1, E), jnp.float32)         # reset_parameters zeroes biases
    return {
        "wq_t": wq.T, "wk_t": wk.T, "wv_t": wv.T, "wo_t": out_proj_weight.T,
        "bq": zeros, "bk": zeros, "bv": zeros, "bo": zeros,
    }


def hydra_attention_reference(query, key, value, params):
    """Pure-JAX f32 reference mirroring the PyTorch forward (mask=None, p=0)."""
    q = query @ params["wq_t"] + params["bq"][0]
    k = key @ params["wk_t"] + params["bk"][0]
    v = value @ params["wv_t"] + params["bv"][0]
    q = q / jnp.linalg.norm(q, axis=-1, keepdims=True)
    k = k / jnp.linalg.norm(k, axis=-1, keepdims=True)
    kvw = k * v
    out = q * jnp.sum(kvw, axis=0, keepdims=True)
    return out @ params["wo_t"] + params["bo"][0]


if __name__ == "__main__":
    embed_dim = 128        # multiple of 128 -> lane-dense loads/stores
    num_heads = 4          # unused by the forward pass (hydra: one head/channel)
    tgt_len, src_len, bsz = 16, 24, 16

    root = jax.random.PRNGKey(0)
    kp, kq, kk, kv = jax.random.split(root, 4)
    params = make_params(embed_dim, kp)

    query = jax.random.normal(kq, (tgt_len, bsz, embed_dim), jnp.float32)
    key = jax.random.normal(kk, (src_len, bsz, embed_dim), jnp.float32)
    value = jax.random.normal(kv, (src_len, bsz, embed_dim), jnp.float32)

    out = hydra_attention_pallas(query, key, value, params)
    out = jax.block_until_ready(out)
    assert out.shape == (tgt_len, bsz, embed_dim)

    ref = hydra_attention_reference(query, key, value, params)
    # bf16 MXU operands (f32 accumulation) vs the f32 reference: use a
    # scale-normalised max-error check (also trips on any NaN/Inf).
    err = float(jnp.max(jnp.abs(out - ref)) / (jnp.max(jnp.abs(ref)) + 1e-12))
    assert err < 4e-2, f"mismatch vs reference: rel max err = {err}"

    print("KERNEL_OK")
</pallas_src>

<mosaic_0001>
module attributes {stable_mosaic.version = 11 : i64} {
  func.func @_hydra_kernel(%arg0: i32, %arg1: i32, %arg2: i32, %arg3: memref<16x16x128xf32, #tpu.memory_space<vmem>>, %arg4: memref<24x16x128xf32, #tpu.memory_space<vmem>>, %arg5: memref<24x16x128xf32, #tpu.memory_space<vmem>>, %arg6: memref<128x128xbf16, #tpu.memory_space<vmem>>, %arg7: memref<128x128xbf16, #tpu.memory_space<vmem>>, %arg8: memref<128x128xbf16, #tpu.memory_space<vmem>>, %arg9: memref<128x128xbf16, #tpu.memory_space<vmem>>, %arg10: memref<1x128xf32, #tpu.memory_space<vmem>>, %arg11: memref<1x128xf32, #tpu.memory_space<vmem>>, %arg12: memref<1x128xf32, #tpu.memory_space<vmem>>, %arg13: memref<1x128xf32, #tpu.memory_space<vmem>>, %arg14: memref<16x16x128xf32, #tpu.memory_space<vmem>>, %arg15: memref<16x128xf32, #tpu.memory_space<vmem>>) attributes {dimension_semantics = [#tpu.dimension_semantics<parallel>, #tpu.dimension_semantics<parallel>, #tpu.dimension_semantics<arbitrary>], iteration_bounds = array<i64: 1, 1, 1>, scalar_prefetch = 0 : i64, scratch_operands = 1 : i64, tpu.core_type = #tpu.core_type<tc>, window_params = [{transform_indices = @transform_0, window_bounds = array<i64: 16, 16, 128>}, {transform_indices = @transform_1, window_bounds = array<i64: 24, 16, 128>}, {transform_indices = @transform_2, window_bounds = array<i64: 24, 16, 128>}, {pipeline_mode = #tpu.pipeline_mode<synchronous>, transform_indices = @transform_3, window_bounds = array<i64: 128, 128>}, {pipeline_mode = #tpu.pipeline_mode<synchronous>, transform_indices = @transform_4, window_bounds = array<i64: 128, 128>}, {pipeline_mode = #tpu.pipeline_mode<synchronous>, transform_indices = @transform_5, window_bounds = array<i64: 128, 128>}, {pipeline_mode = #tpu.pipeline_mode<synchronous>, transform_indices = @transform_6, window_bounds = array<i64: 128, 128>}, {pipeline_mode = #tpu.pipeline_mode<synchronous>, transform_indices = @transform_7, window_bounds = array<i64: 1, 128>}, {pipeline_mode = #tpu.pipeline_mode<synchronous>, transform_indices = @transform_8, window_bounds = array<i64: 1, 128>}, {pipeline_mode = #tpu.pipeline_mode<synchronous>, transform_indices = @transform_9, window_bounds = array<i64: 1, 128>}, {pipeline_mode = #tpu.pipeline_mode<synchronous>, transform_indices = @transform_10, window_bounds = array<i64: 1, 128>}, {transform_indices = @transform_11, window_bounds = array<i64: 16, 16, 128>}]} {
    %c0_i32 = arith.constant 0 : i32
    %0 = arith.cmpi eq, %arg2, %c0_i32 : i32
    %1 = arith.extui %0 : i1 to i32
    %c0_i32_0 = arith.constant 0 : i32
    %2 = arith.cmpi ne, %1, %c0_i32_0 : i32
    scf.if %2 {
      %cst_23 = arith.constant 0.000000e+00 : f32
      %34 = vector.broadcast %cst_23 : f32 to vector<16x128xf32>
      %c0_24 = arith.constant 0 : index
      %c0_25 = arith.constant 0 : index
      %35 = vector.load %arg15[%c0_24, %c0_25] : memref<16x128xf32, #tpu.memory_space<vmem>>, vector<16x128xf32>
      tpu.vector_store %arg15[%c0_24, %c0_25], %34 {strides = array<i32>} : memref<16x128xf32, #tpu.memory_space<vmem>>, vector<16x128xf32>,
    } else {
    }
    %c0 = arith.constant 0 : index
    %c0_1 = arith.constant 0 : index
    %c0_2 = arith.constant 0 : index
    %3 = vector.load %arg4[%c0, %c0_1, %c0_2] : memref<24x16x128xf32, #tpu.memory_space<vmem>>, vector<24x16x128xf32>
    %4 = vector.shape_cast %3 : vector<24x16x128xf32> to vector<384x128xf32>
    %5 = arith.truncf %4 : vector<384x128xf32> to vector<384x128xbf16>
    %c0_3 = arith.constant 0 : index
    %c0_4 = arith.constant 0 : index
    %6 = vector.load %arg7[%c0_3, %c0_4] : memref<128x128xbf16, #tpu.memory_space<vmem>>, vector<128x128xbf16>
    %cst = arith.constant dense<0.000000e+00> : vector<384x128xf32>
    %7 = tpu.matmul %5, %6, %cst {dimension_numbers = #tpu.dot_dimension_numbers<[1], [0], [0], [1], [0, 0, 1, 1], [], []>} : vector<384x128xbf16>, vector<128x128xbf16>, vector<384x128xf32> -> vector<384x128xf32>
    %c0_5 = arith.constant 0 : index
    %c0_6 = arith.constant 0 : index
    %8 = vector.load %arg11[%c0_5, %c0_6] : memref<1x128xf32, #tpu.memory_space<vmem>>, vector<1x128xf32>
    %9 = vector.broadcast %8 : vector<1x128xf32> to vector<384x128xf32>
    %10 = arith.addf %7, %9 : vector<384x128xf32>
    %11 = arith.mulf %10, %10 : vector<384x128xf32>
    %cst_7 = arith.constant dense<0.000000e+00> : vector<384xf32>
    %12 = vector.multi_reduction <add>, %11, %cst_7 [1] : vector<384x128xf32> to vector<384xf32>
    %13 = vector.shape_cast %12 : vector<384xf32> to vector<384x1xf32>
    %14 = math.rsqrt %13 : vector<384x1xf32>
    %15 = vector.broadcast %14 : vector<384x1xf32> to vector<384x128xf32>
    %16 = arith.mulf %10, %15 : vector<384x128xf32>
    %c0_8 = arith.constant 0 : index
    %c0_9 = arith.constant 0 : index
    %c0_10 = arith.constant 0 : index
    %17 = vector.load %arg5[%c0_8, %c0_9, %c0_10] : memref<24x16x128xf32, #tpu.memory_space<vmem>>, vector<24x16x128xf32>
    %18 = vector.shape_cast %17 : vector<24x16x128xf32> to vector<384x128xf32>
    %19 = arith.truncf %18 : vector<384x128xf32> to vector<384x128xbf16>
    %c0_11 = arith.constant 0 : index
    %c0_12 = arith.constant 0 : index
    %20 = vector.load %arg8[%c0_11, %c0_12] : memref<128x128xbf16, #tpu.memory_space<vmem>>, vector<128x128xbf16>
    %cst_13 = arith.constant dense<0.000000e+00> : vector<384x128xf32>
    %21 = tpu.matmul %19, %20, %cst_13 {dimension_numbers = #tpu.dot_dimension_numbers<[1], [0], [0], [1], [0, 0, 1, 1], [], []>} : vector<384x128xbf16>, vector<128x128xbf16>, vector<384x128xf32> -> vector<384x128xf32>
    %c0_14 = arith.constant 0 : index
    %c0_15 = arith.constant 0 : index
    %22 = vector.load %arg12[%c0_14, %c0_15] : memref<1x128xf32, #tpu.memory_space<vmem>>, vector<1x128xf32>
    %23 = vector.broadcast %22 : vector<1x128xf32> to vector<384x128xf32>
    %24 = arith.addf %21, %23 : vector<384x128xf32>
    %25 = arith.mulf %16, %24 : vector<384x128xf32>
    %26 = vector.shape_cast %25 : vector<384x128xf32> to vector<24x16x128xf32>
    %c0_16 = arith.constant 0 : index
    %c0_17 = arith.constant 0 : index
    %27 = vector.load %arg15[%c0_16, %c0_17] : memref<16x128xf32, #tpu.memory_space<vmem>>, vector<16x128xf32>
    %cst_18 = arith.constant dense<0.000000e+00> : vector<16x128xf32>
    %28 = vector.multi_reduction <add>, %26, %cst_18 [0] : vector<24x16x128xf32> to vector<16x128xf32>
    %29 = arith.addf %27, %28 : vector<16x128xf32>
    %c0_19 = arith.constant 0 : index
    %c0_20 = arith.constant 0 : index
    %30 = vector.load %arg15[%c0_19, %c0_20] : memref<16x128xf32, #tpu.memory_space<vmem>>, vector<16x128xf32>
    tpu.vector_store %arg15[%c0_19, %c0_20], %29 {strides = array<i32>} : memref<16x128xf32, #tpu.memory_space<vmem>>, vector<16x128xf32>,
    %c0_i32_21 = arith.constant 0 : i32
    %31 = arith.cmpi eq, %arg2, %c0_i32_21 : i32
    %32 = arith.extui %31 : i1 to i32
    %c0_i32_22 = arith.constant 0 : i32
    %33 = arith.cmpi ne, %32, %c0_i32_22 : i32
    scf.if %33 {
      %c0_23 = arith.constant 0 : index
      %c0_24 = arith.constant 0 : index
      %c0_25 = arith.constant 0 : index
      %34 = vector.load %arg3[%c0_23, %c0_24, %c0_25] : memref<16x16x128xf32, #tpu.memory_space<vmem>>, vector<16x16x128xf32>
      %35 = vector.shape_cast %34 : vector<16x16x128xf32> to vector<256x128xf32>
      %36 = arith.truncf %35 : vector<256x128xf32> to vector<256x128xbf16>
      %c0_26 = arith.constant 0 : index
      %c0_27 = arith.constant 0 : index
      %37 = vector.load %arg6[%c0_26, %c0_27] : memref<128x128xbf16, #tpu.memory_space<vmem>>, vector<128x128xbf16>
      %cst_28 = arith.constant dense<0.000000e+00> : vector<256x128xf32>
      %38 = tpu.matmul %36, %37, %cst_28 {dimension_numbers = #tpu.dot_dimension_numbers<[1], [0], [0], [1], [0, 0, 1, 1], [], []>} : vector<256x128xbf16>, vector<128x128xbf16>, vector<256x128xf32> -> vector<256x128xf32>
      %c0_29 = arith.constant 0 : index
      %c0_30 = arith.constant 0 : index
      %39 = vector.load %arg10[%c0_29, %c0_30] : memref<1x128xf32, #tpu.memory_space<vmem>>, vector<1x128xf32>
      %40 = vector.broadcast %39 : vector<1x128xf32> to vector<256x128xf32>
      %41 = arith.addf %38, %40 : vector<256x128xf32>
      %42 = arith.mulf %41, %41 : vector<256x128xf32>
      %cst_31 = arith.constant dense<0.000000e+00> : vector<256xf32>
      %43 = vector.multi_reduction <add>, %42, %cst_31 [1] : vector<256x128xf32> to vector<256xf32>
      %44 = vector.shape_cast %43 : vector<256xf32> to vector<256x1xf32>
      %45 = math.rsqrt %44 : vector<256x1xf32>
      %46 = vector.broadcast %45 : vector<256x1xf32> to vector<256x128xf32>
      %47 = arith.mulf %41, %46 : vector<256x128xf32>
      %48 = vector.shape_cast %47 : vector<256x128xf32> to vector<16x16x128xf32>
      %c0_32 = arith.constant 0 : index
      %c0_33 = arith.constant 0 : index
      %49 = vector.load %arg15[%c0_32, %c0_33] : memref<16x128xf32, #tpu.memory_space<vmem>>, vector<16x128xf32>
      %50 = vector.shape_cast %49 : vector<16x128xf32> to vector<1x16x128xf32>
      %51 = vector.broadcast %50 : vector<1x16x128xf32> to vector<16x16x128xf32>
      %52 = arith.mulf %48, %51 : vector<16x16x128xf32>
      %53 = vector.shape_cast %52 : vector<16x16x128xf32> to vector<256x128xf32>
      %54 = arith.truncf %53 : vector<256x128xf32> to vector<256x128xbf16>
      %c0_34 = arith.constant 0 : index
      %c0_35 = arith.constant 0 : index
      %55 = vector.load %arg9[%c0_34, %c0_35] : memref<128x128xbf16, #tpu.memory_space<vmem>>, vector<128x128xbf16>
      %cst_36 = arith.constant dense<0.000000e+00> : vector<256x128xf32>
      %56 = tpu.matmul %54, %55, %cst_36 {dimension_numbers = #tpu.dot_dimension_numbers<[1], [0], [0], [1], [0, 0, 1, 1], [], []>} : vector<256x128xbf16>, vector<128x128xbf16>, vector<256x128xf32> -> vector<256x128xf32>
      %c0_37 = arith.constant 0 : index
      %c0_38 = arith.constant 0 : index
      %57 = vector.load %arg13[%c0_37, %c0_38] : memref<1x128xf32, #tpu.memory_space<vmem>>, vector<1x128xf32>
      %58 = vector.broadcast %57 : vector<1x128xf32> to vector<256x128xf32>
      %59 = arith.addf %56, %58 : vector<256x128xf32>
      %60 = vector.shape_cast %59 : vector<256x128xf32> to vector<16x16x128xf32>
      %c0_39 = arith.constant 0 : index
      %c0_40 = arith.constant 0 : index
      %c0_41 = arith.constant 0 : index
      %61 = vector.load %arg14[%c0_39, %c0_40, %c0_41] : memref<16x16x128xf32, #tpu.memory_space<vmem>>, vector<16x16x128xf32>
      tpu.vector_store %arg14[%c0_39, %c0_40, %c0_41], %60 {strides = array<i32>} : memref<16x16x128xf32, #tpu.memory_space<vmem>>, vector<16x16x128xf32>,
    } else {
    }
    return
  }
  func.func @transform_0(%arg0: i32, %arg1: i32, %arg2: i32) -> (i32, i32, i32) {
    %c0_i32 = arith.constant 0 : i32
    %c0_i32_0 = arith.constant 0 : i32
    return %arg1, %arg0, %c0_i32 : i32, i32, i32
  }
  func.func @transform_1(%arg0: i32, %arg1: i32, %arg2: i32) -> (i32, i32, i32) {
    %c0_i32 = arith.constant 0 : i32
    %c0_i32_0 = arith.constant 0 : i32
    return %arg2, %arg0, %c0_i32 : i32, i32, i32
  }
  func.func @transform_2(%arg0: i32, %arg1: i32, %arg2: i32) -> (i32, i32, i32) {
    %c0_i32 = arith.constant 0 : i32
    %c0_i32_0 = arith.constant 0 : i32
    return %arg2, %arg0, %c0_i32 : i32, i32, i32
  }
  func.func @transform_3(%arg0: i32, %arg1: i32, %arg2: i32) -> (i32, i32) {
    %c0_i32 = arith.constant 0 : i32
    %c0_i32_0 = arith.constant 0 : i32
    %c0_i32_1 = arith.constant 0 : i32
    return %c0_i32, %c0_i32_0 : i32, i32
  }
  func.func @transform_4(%arg0: i32, %arg1: i32, %arg2: i32) -> (i32, i32) {
    %c0_i32 = arith.constant 0 : i32
    %c0_i32_0 = arith.constant 0 : i32
    %c0_i32_1 = arith.constant 0 : i32
    return %c0_i32, %c0_i32_0 : i32, i32
  }
  func.func @transform_5(%arg0: i32, %arg1: i32, %arg2: i32) -> (i32, i32) {
    %c0_i32 = arith.constant 0 : i32
    %c0_i32_0 = arith.constant 0 : i32
    %c0_i32_1 = arith.constant 0 : i32
    return %c0_i32, %c0_i32_0 : i32, i32
  }
  func.func @transform_6(%arg0: i32, %arg1: i32, %arg2: i32) -> (i32, i32) {
    %c0_i32 = arith.constant 0 : i32
    %c0_i32_0 = arith.constant 0 : i32
    %c0_i32_1 = arith.constant 0 : i32
    return %c0_i32, %c0_i32_0 : i32, i32
  }
  func.func @transform_7(%arg0: i32, %arg1: i32, %arg2: i32) -> (i32, i32) {
    %c0_i32 = arith.constant 0 : i32
    %c0_i32_0 = arith.constant 0 : i32
    %c0_i32_1 = arith.constant 0 : i32
    return %c0_i32, %c0_i32_0 : i32, i32
  }
  func.func @transform_8(%arg0: i32, %arg1: i32, %arg2: i32) -> (i32, i32) {
    %c0_i32 = arith.constant 0 : i32
    %c0_i32_0 = arith.constant 0 : i32
    %c0_i32_1 = arith.constant 0 : i32
    return %c0_i32, %c0_i32_0 : i32, i32
  }
  func.func @transform_9(%arg0: i32, %arg1: i32, %arg2: i32) -> (i32, i32) {
    %c0_i32 = arith.constant 0 : i32
    %c0_i32_0 = arith.constant 0 : i32
    %c0_i32_1 = arith.constant 0 : i32
    return %c0_i32, %c0_i32_0 : i32, i32
  }
  func.func @transform_10(%arg0: i32, %arg1: i32, %arg2: i32) -> (i32, i32) {
    %c0_i32 = arith.constant 0 : i32
    %c0_i32_0 = arith.constant 0 : i32
    %c0_i32_1 = arith.constant 0 : i32
    return %c0_i32, %c0_i32_0 : i32, i32
  }
  func.func @transform_11(%arg0: i32, %arg1: i32, %arg2: i32) -> (i32, i32, i32) {
    %c0_i32 = arith.constant 0 : i32
    %c0_i32_0 = arith.constant 0 : i32
    return %arg1, %arg0, %c0_i32 : i32, i32, i32
  }
}

</mosaic_0001>

<bundles_post_ra>
// kernel: tpu_custom_call.1
= control target key start
LH: loop header
LB: loop body
LE: loop exit
PB: predicated region body
PF: predicated region fallthrough
CT: control target
= control target key end

     0   :  { %16 = vsyncpa [#allocation4], 0  ;;  %s3617_s0 = inlined_call_operand.hbm [shape: f32[16,16,128], index: 0, kind: input, shape index: {}]   ;;  %s3618_s1 = inlined_call_operand.hbm [shape: f32[24,16,128], index: 1, kind: input, shape index: {}]   ;;  %s3619_s2 = inlined_call_operand.hbm [shape: f32[24,16,128], index: 2, kind: input, shape index: {}]   ;;  %s3620_s3 = inlined_call_operand.hbm [shape: bf16[128,128], index: 3, kind: input, shape index: {}]   ;;  %s3621_s4 = inlined_call_operand.hbm [shape: bf16[128,128], index: 4, kind: input, shape index: {}]   ;;  %s3622_s5 = inlined_call_operand.hbm [shape: bf16[128,128], index: 5, kind: input, shape index: {}]   ;;  %s3623_s6 = inlined_call_operand.hbm [shape: bf16[128,128], index: 6, kind: input, shape index: {}]   ;;  %s3624_s7 = inlined_call_operand.vmem [shape: f32[1,128], index: 7, kind: input, shape index: {}]   ;;  %s3625_s8 = inlined_call_operand.vmem [shape: f32[1,128], index: 8, kind: input, shape index: {}]   ;;  %s3626_s9 = inlined_call_operand.vmem [shape: f32[1,128], index: 9, kind: input, shape index: {}]   ;;  %s3627_s10 = inlined_call_operand.vmem [shape: f32[1,128], index: 10, kind: input, shape index: {}]   ;;  %s3628_s11 = inlined_call_operand.hbm [shape: f32[16,16,128], index: 11, kind: output, shape index: {}]  }
   0x1   :  { %17 = vsyncpa [#allocation7], 0 }
   0x2   :  { %18 = vsyncpa [#allocation10], 0 }
   0x3   :  { %19 = vsyncpa [#allocation13], 0 }
   0x4   :  { %20 = vsyncpa [#allocation5], 0  ;;  %s2740_s17 = smov [#allocation6]   ;;  %s2741_s19 = smov [#allocation9]  }
   0x5   :  { %s38_s18 = sshll.u32 %s2740_s17, 4  ;;  %s62_s20 = sshll.u32 %s2741_s19, 4  ;;  %s39_s18 = int_to_ptr.vmem [resolvable:$true] %s38_s18  ;;  %s63_s20 = int_to_ptr.vmem [resolvable:$true] %s62_s20 }
   0x6   :  { %s2578_s21 = scalar_lea.vmem %s39_s18, 6144  ;;  %p2583_p1 = scmp.lt.s32.totalorder %s39_s18, %s39_s18 }
   0x7   :  { %p2579_p0 = scmp.ne.s32.totalorder %s39_s18, %s2578_s21  ;;  %p2584_p2 = scmp.lt.s32.totalorder %s2578_s21, %s2578_s21 }
   0x9   :  { %p2585_p3 = por %p2584_p2, %p2583_p1 }
   0xb   :  { %p2586_p4 = pnand %p2585_p3, %p2579_p0 }
   0xd   :  { %2589 = shalt.err (!%p2586_p4)
}
   0xe   :  { %s2742_s22 = smov 128   ;;  %s2743_s23 = smov 8  }
   0xf   :  { %44 = dma.hbm_to_vmem [thread:$0]  %s3618_s1, 6144, %s39_s18, [#allocation7], %s2742_s22, %s2742_s22, %s2743_s23  }
  0x10   :  { %s2598_s26 = scalar_lea.vmem %s63_s20, 1024  ;;  %p2603_p6 = scmp.lt.s32.totalorder %s63_s20, %s63_s20 }
  0x11   :  { %p2599_p5 = scmp.ne.s32.totalorder %s63_s20, %s2598_s26  ;;  %p2604_p7 = scmp.lt.s32.totalorder %s2598_s26, %s2598_s26 }
  0x13   :  { %p2605_p8 = por %p2604_p7, %p2603_p6 }
  0x15   :  { %p2606_p9 = pnand %p2605_p8, %p2599_p5 }
  0x17   :  { %2609 = shalt.err (!%p2606_p9)
}
  0x18   :  { %s2744_s27 = smov 64   ;;  %s2745_s28 = smov 4  }
  0x19   :  { %68 = dma.hbm_to_vmem [thread:$0]  %s3620_s3, 1024, %s63_s20, [#allocation10], %s2744_s27, %s2744_s27, %s2745_s28  }
  0x1a   :  { %s2746_s12 = smov [#allocation12]   ;;  %s2747_s14 = smov [#allocation3]  }
  0x1b   :  { %s86_s13 = sshll.u32 %s2746_s12, 4  ;;  %s26_s1 = sshll.u32 %s2747_s14, 4  ;;  %s87_s13 = int_to_ptr.vmem [resolvable:$true] %s86_s13  ;;  %s27_s1 = int_to_ptr.vmem [resolvable:$true] %s26_s1 }
  0x1c   :  { %s2618_s15 = scalar_lea.vmem %s87_s13, 1024  ;;  %p2623_p11 = scmp.lt.s32.totalorder %s87_s13, %s87_s13 }
  0x1d   :  { %p2619_p10 = scmp.ne.s32.totalorder %s87_s13, %s2618_s15  ;;  %p2624_p12 = scmp.lt.s32.totalorder %s2618_s15, %s2618_s15 }
  0x1f   :  { %p2625_p13 = por %p2624_p12, %p2623_p11 }
  0x21   :  { %p2626_p0 = pnand %p2625_p13, %p2619_p10 }
  0x23   :  { %2629 = shalt.err (!%p2626_p0)
}
  0x24   :  { %92 = dma.hbm_to_vmem [thread:$0]  %s3622_s5, 1024, %s87_s13, [#allocation13], %s2744_s27, %s2744_s27, %s2745_s28  }
  0x25   :  { %s2638_s3 = scalar_lea.vmem %s27_s1, 4096  ;;  %p2643_p2 = scmp.lt.s32.totalorder %s27_s1, %s27_s1 }
  0x26   :  { %p2639_p1 = scmp.ne.s32.totalorder %s27_s1, %s2638_s3  ;;  %p2644_p3 = scmp.lt.s32.totalorder %s2638_s3, %s2638_s3 }
  0x28   :  { %p2645_p4 = por %p2644_p3, %p2643_p2 }
  0x2a   :  { %p2646_p5 = pnand %p2645_p4, %p2639_p1 }
  0x2c   :  { %2649 = shalt.err (!%p2646_p5)
}
  0x2d   :  { %32 = dma.hbm_to_vmem [thread:$0]  %s3617_s0, 4096, %s27_s1, [#allocation4], %s2742_s22, %s2742_s22, %s2743_s23  }
  0x2e   :  { %s2748_s20 = smov [#allocation8]   ;;  %s2749_s24 = smov [#allocation11]  }
  0x2f   :  { %s50_s21 = sshll.u32 %s2748_s20, 4  ;;  %s74_s25 = sshll.u32 %s2749_s24, 4  ;;  %s51_s21 = int_to_ptr.vmem [resolvable:$true] %s50_s21  ;;  %s75_s25 = int_to_ptr.vmem [resolvable:$true] %s74_s25 }
  0x30   :  { %s2658_s5 = scalar_lea.vmem %s51_s21, 6144  ;;  %p2663_p7 = scmp.lt.s32.totalorder %s51_s21, %s51_s21 }
  0x31   :  { %p2659_p6 = scmp.ne.s32.totalorder %s51_s21, %s2658_s5  ;;  %p2664_p8 = scmp.lt.s32.totalorder %s2658_s5, %s2658_s5 }
  0x33   :  { %p2665_p9 = por %p2664_p8, %p2663_p7 }
  0x35   :  { %p2666_p10 = pnand %p2665_p9, %p2659_p6 }
  0x37   :  { %2669 = shalt.err (!%p2666_p10)
}
  0x38   :  { %56 = dma.hbm_to_vmem [thread:$0]  %s3619_s2, 6144, %s51_s21, [#allocation7], %s2742_s22, %s2742_s22, %s2743_s23  }
  0x39   :  { %s2678_s0 = scalar_lea.vmem %s75_s25, 1024  ;;  %p2683_p12 = scmp.lt.s32.totalorder %s75_s25, %s75_s25 }
  0x3a   :  { %p2679_p11 = scmp.ne.s32.totalorder %s75_s25, %s2678_s0  ;;  %p2684_p13 = scmp.lt.s32.totalorder %s2678_s0, %s2678_s0 }
  0x3c   :  { %p2685_p0 = por %p2684_p13, %p2683_p12 }
  0x3e   :  { %p2686_p1 = pnand %p2685_p0, %p2679_p11 }
  0x40   :  { %2689 = shalt.err (!%p2686_p1)
}
  0x41   :  { %80 = dma.hbm_to_vmem [thread:$0]  %s3621_s4, 1024, %s75_s25, [#allocation10], %s2744_s27, %s2744_s27, %s2745_s28  }
  0x42   :  { %s2750_s13 = smov [#allocation14]  }
  0x43   :  { %s98_s14 = sshll.u32 %s2750_s13, 4  ;;  %s99_s14 = int_to_ptr.vmem [resolvable:$true] %s98_s14 }
  0x44   :  { %s2698_s1 = scalar_lea.vmem %s99_s14, 1024  ;;  %p2703_p3 = scmp.lt.s32.totalorder %s99_s14, %s99_s14 }
  0x45   :  { %p2699_p2 = scmp.ne.s32.totalorder %s99_s14, %s2698_s1  ;;  %p2704_p4 = scmp.lt.s32.totalorder %s2698_s1, %s2698_s1 }
  0x47   :  { %p2705_p5 = por %p2704_p4, %p2703_p3 }
  0x49   :  { %p2706_p6 = pnand %p2705_p5, %p2699_p2 }
  0x4b   :  { %2709 = shalt.err (!%p2706_p6)
}
  0x4c   :  { %104 = dma.hbm_to_vmem [thread:$0]  %s3623_s6, 1024, %s99_s14, [#allocation13], %s2744_s27, %s2744_s27, %s2745_s28  }
  0x4d   :  { %2730 = dma.done.wait [#allocation4], 4096  }
  0x4e   :  { %2731 = vsyncadd [#allocation4], 4294963200 }
  0x4f   :  { %2732 = dma.done.wait [#allocation7], 12288  }
  0x50   :  { %2733 = vsyncadd [#allocation7], 4294955008 }
  0x51   :  { %2734 = dma.done.wait [#allocation10], 2048  }
  0x52   :  { %2735 = vsyncadd [#allocation10], 4294965248 }
  0x53   :  { %2736 = dma.done.wait [#allocation13], 2048  }
  0x54   :  { %2737 = vsyncadd [#allocation13], 4294965248  ;;  %v2378_v0 = vld [vmem:[#allocation11 + $0x38] sm:$0xff]   ;;  %v2379_v1 = vld [vmem:[#allocation11 + $0x30] sm:$0xff]  }
  0x55   :  { %2142 = vmatprep.subr.bf16.mxu0 %v2378_v0  ;;  %v2380_v2 = vld [vmem:[#allocation11 + $0x28] sm:$0xff]   ;;  %v2381_v3 = vld [vmem:[#allocation11 + $0x20] sm:$0xff]   ;;  %v2382_v7 = vld [vmem:[#allocation11 + $0x18] sm:$0xff]  }
  0x56   :  { %2143 = vmatpush3.bf16.msra.mxu0 %v2378_v0  ;;  %v141_v4 = vld [vmem:[#allocation6] sm:$0xff]  ;;  %v142_v5 = vld [vmem:[#allocation6 + $0x8] sm:$0xff]  ;;  %v2383_v8 = vld [vmem:[#allocation11 + $0x10] sm:$0xff]  }
  0x57   :  { %2144 = vmatprep.subr.bf16.mxu0 %v2379_v1  ;;  %v189_v6 = vpack.c.bf16 %v142_v5, %v141_v4  ;;  %v2384_v9 = vld [vmem:[#allocation11 + $0x8] sm:$0xff]   ;;  %v2385_v10 = vld [vmem:[#allocation11] sm:$0xff]   ;;  %v143_v11 = vld [vmem:[#allocation6 + $0x10] sm:$0xff] }
  0x58   :  { %v144_v12 = vld [vmem:[#allocation6 + $0x18] sm:$0xff]  ;;  %v145_v14 = vld [vmem:[#allocation6 + $0x20] sm:$0xff]  ;;  %v146_v15 = vld [vmem:[#allocation6 + $0x28] sm:$0xff] }
  0x59   :  { %2158 = vmatprep.mubr.bf16.mxu0 %v189_v6  ;;  %v2386_v13 = vld [vmem:[#allocation9 + $0x38] sm:$0xff]   ;;  %v190_v16 = vpack.c.bf16 %v144_v12, %v143_v11  ;;  %v191_v17 = vpack.c.bf16 %v146_v15, %v145_v14  ;;  %v2387_v18 = vld [vmem:[#allocation9 + $0x30] sm:$0xff]   ;;  %v149_v21 = vld [vmem:[#allocation6 + $0x40] sm:$0xff] }
  0x5a   :  { %2145 = vmatpush3.bf16.msra.mxu0 %v2379_v1  ;;  %v147_v19 = vld [vmem:[#allocation6 + $0x30] sm:$0xff]  ;;  %v148_v20 = vld [vmem:[#allocation6 + $0x38] sm:$0xff]  ;;  %v150_v22 = vld [vmem:[#allocation6 + $0x48] sm:$0xff] }
  0x5b   :  { %2146 = vmatprep.subr.bf16.mxu0 %v2380_v2  ;;  %v2388_v23 = vld [vmem:[#allocation9 + $0x28] sm:$0xff]   ;;  %v192_v24 = vpack.c.bf16 %v148_v20, %v147_v19  ;;  %v2394_v25 = vld [vmem:[#allocation12 + $0x38] sm:$0xff]   ;;  %v193_v26 = vpack.c.bf16 %v150_v22, %v149_v21  ;;  %v2395_v27 = vld [vmem:[#allocation12 + $0x30] sm:$0xff]  }
  0x5c   :  { %v2389_v28 = vld [vmem:[#allocation9 + $0x20] sm:$0xff]   ;;  %2206 = vmatprep.subr.bf16.mxu1 %v2394_v25  ;;  %v151_v29 = vld [vmem:[#allocation6 + $0x50] sm:$0xff]  ;;  %v2396_v30 = vld [vmem:[#allocation12 + $0x28] sm:$0xff]  }
  0x5d   :  { %2207 = vmatpush3.bf16.msra.mxu1 %v2394_v25  ;;  %v152_v31 = vld [vmem:[#allocation6 + $0x58] sm:$0xff]  ;;  %v153_v32 = vld [vmem:[#allocation6 + $0x60] sm:$0xff]  ;;  %v154_v33 = vld [vmem:[#allocation6 + $0x68] sm:$0xff] }
  0x5e   :  { %2147 = vmatpush3.bf16.msra.mxu0 %v2380_v2  ;;  %2208 = vmatprep.subr.bf16.mxu1 %v2395_v27  ;;  %v2390_v34 = vld [vmem:[#allocation9 + $0x18] sm:$0xff]   ;;  %v194_v35 = vpack.c.bf16 %v152_v31, %v151_v29  ;;  %v2397_v36 = vld [vmem:[#allocation12 + $0x20] sm:$0xff]   ;;  %v195_v37 = vpack.c.bf16 %v154_v33, %v153_v32  ;;  %v2391_v38 = vld [vmem:[#allocation9 + $0x10] sm:$0xff]  }
  0x5f   :  { %2148 = vmatprep.subr.bf16.mxu0 %v2381_v3  ;;  %v155_v39 = vld [vmem:[#allocation6 + $0x70] sm:$0xff]  ;;  %v156_v40 = vld [vmem:[#allocation6 + $0x78] sm:$0xff]  ;;  %v157_v42 = vld [vmem:[#allocation6 + $0x80] sm:$0xff] }
  0x60   :  { %v2398_v41 = vld [vmem:[#allocation12 + $0x18] sm:$0xff]   ;;  %v158_v43 = vld [vmem:[#allocation6 + $0x88] sm:$0xff]  ;;  %v2399_v45 = vld [vmem:[#allocation12 + $0x10] sm:$0xff]   ;;  %v196_v46 = vpack.c.bf16 %v156_v40, %v155_v39 }
  0x61   :  { %2209 = vmatpush3.bf16.msra.mxu1 %v2395_v27  ;;  %v2392_v44 = vld [vmem:[#allocation9 + $0x8] sm:$0xff]   ;;  %v197_v47 = vpack.c.bf16 %v158_v43, %v157_v42  ;;  %v2393_v48 = vld [vmem:[#allocation9] sm:$0xff]   ;;  %v159_v53 = vld [vmem:[#allocation6 + $0x90] sm:$0xff] }
  0x62   :  { %2149 = vmatpush3.bf16.msra.mxu0 %v2381_v3  ;;  %2210 = vmatprep.subr.bf16.mxu1 %v2396_v30  ;;  %v749_v49 = vld [vmem:[#allocation8] sm:$0xff]  ;;  %v750_v50 = vld [vmem:[#allocation8 + $0x8] sm:$0xff]  ;;  %v160_v54 = vld [vmem:[#allocation6 + $0x98] sm:$0xff] }
  0x63   :  { %2150 = vmatprep.subr.bf16.mxu0 %v2382_v7  ;;  %v2400_v51 = vld [vmem:[#allocation12 + $0x8] sm:$0xff]   ;;  %v797_v52 = vpack.c.bf16 %v750_v50, %v749_v49  ;;  %v161_v55 = vld [vmem:[#allocation6 + $0xa0] sm:$0xff]  ;;  %v198_v57 = vpack.c.bf16 %v160_v54, %v159_v53  ;;  %v751_v60 = vld [vmem:[#allocation8 + $0x10] sm:$0xff] }
  0x64   :  { %v162_v56 = vld [vmem:[#allocation6 + $0xa8] sm:$0xff]  ;;  %v2401_v58 = vld [vmem:[#allocation12] sm:$0xff]   ;;  %v752_v61 = vld [vmem:[#allocation8 + $0x18] sm:$0xff] }
  0x65   :  { %2211 = vmatpush3.bf16.msra.mxu1 %v2396_v30  ;;  %2222 = vmatprep.mubr.bf16.mxu1 %v797_v52  ;;  %v199_v59 = vpack.c.bf16 %v162_v56, %v161_v55  ;;  %v753_v62 = vld [vmem:[#allocation8 + $0x20] sm:$0xff]  ;;  %v754_v63 = vld [vmem:[#allocation8 + $0x28] sm:$0xff]  ;;  %v163_v0 = vld [vmem:[#allocation6 + $0xb0] sm:$0xff]  ;;  %v798_v4 = vpack.c.bf16 %v752_v61, %v751_v60 }
  0x66   :  { %2151 = vmatpush3.bf16.msra.mxu0 %v2382_v7  ;;  %2212 = vmatprep.subr.bf16.mxu1 %v2397_v36  ;;  %v164_v1 = vld [vmem:[#allocation6 + $0xb8] sm:$0xff]  ;;  %v165_v2 = vld [vmem:[#allocation6 + $0xc0] sm:$0xff]  ;;  %v166_v3 = vld [vmem:[#allocation6 + $0xc8] sm:$0xff]  ;;  %v799_v5 = vpack.c.bf16 %v754_v63, %v753_v62 }
  0x67   :  { %2152 = vmatprep.subr.bf16.mxu0 %v2383_v8  ;;  %v200_v6 = vpack.c.bf16 %v164_v1, %v163_v0  ;;  %v201_v7 = vpack.c.bf16 %v166_v3, %v165_v2  ;;  %v758_v11 = vld [vmem:[#allocation8 + $0x48] sm:$0xff]  ;;  %v167_v12 = vld [vmem:[#allocation6 + $0xd0] sm:$0xff]  ;;  %v169_v14 = vld [vmem:[#allocation6 + $0xe0] sm:$0xff] }
  0x68   :  { %v170_v15 = vld [vmem:[#allocation6 + $0xe8] sm:$0xff]  ;;  %v759_v20 = vld [vmem:[#allocation8 + $0x50] sm:$0xff]  ;;  %v760_v21 = vld [vmem:[#allocation8 + $0x58] sm:$0xff] }
  0x69   :  { %2213 = vmatpush3.bf16.msra.mxu1 %v2397_v36  ;;  %v203_v19 = vpack.c.bf16 %v170_v15, %v169_v14  ;;  %v761_v22 = vld [vmem:[#allocation8 + $0x60] sm:$0xff]  ;;  %v172_v25 = vld [vmem:[#allocation6 + $0xf8] sm:$0xff]  ;;  %v174_v27 = vld [vmem:[#allocation6 + $0x108] sm:$0xff] }
  0x6a   :  { %2153 = vmatpush3.bf16.msra.mxu0 %v2383_v8  ;;  %2214 = vmatprep.subr.bf16.mxu1 %v2398_v41  ;;  %v755_v8 = vld [vmem:[#allocation8 + $0x30] sm:$0xff]  ;;  %v764_v33 = vld [vmem:[#allocation8 + $0x78] sm:$0xff]  ;;  %v178_v39 = vld [vmem:[#allocation6 + $0x128] sm:$0xff] }
  0x6b   :  { %2154 = vmatprep.subr.bf16.mxu0 %v2384_v9  ;;  %v763_v32 = vld [vmem:[#allocation8 + $0x70] sm:$0xff]  ;;  %v180_v49 = vld [vmem:[#allocation6 + $0x138] sm:$0xff]  ;;  %v181_v50 = vld [vmem:[#allocation6 + $0x140] sm:$0xff] }
  0x6c   :  { %v175_v36 = vld [vmem:[#allocation6 + $0x110] sm:$0xff]  ;;  %v804_v40 = vpack.c.bf16 %v764_v33, %v763_v32  ;;  %v184_v61 = vld [vmem:[#allocation6 + $0x158] sm:$0xff]  ;;  %v185_v62 = vld [vmem:[#allocation6 + $0x160] sm:$0xff] }
  0x6d   :  { %2215 = vmatpush3.bf16.msra.mxu1 %v2398_v41  ;;  %v771_v56 = vld [vmem:[#allocation8 + $0xb0] sm:$0xff]  ;;  %v186_v63 = vld [vmem:[#allocation6 + $0x168] sm:$0xff]  ;;  %v1227_v33 = vld [vmem:[#allocation3 + $0x38] sm:$0xff] }
  0x6e   :  { %2155 = vmatpush3.bf16.msra.mxu0 %v2384_v9  ;;  %2216 = vmatprep.subr.bf16.mxu1 %v2399_v45  ;;  %v756_v9 = vld [vmem:[#allocation8 + $0x38] sm:$0xff]  ;;  %v183_v60 = vld [vmem:[#allocation6 + $0x150] sm:$0xff]  ;;  %v211_v3 = vpack.c.bf16 %v186_v63, %v185_v62 }
  0x6f   :  { %2156 = vmatprep.subr.bf16.mxu0 %v2385_v10  ;;  %v210_v2 = vpack.c.bf16 %v184_v61, %v183_v60  ;;  %v1226_v32 = vld [vmem:[#allocation3 + $0x30] sm:$0xff] }
  0x71   :  { %2217 = vmatpush3.bf16.msra.mxu1 %v2399_v45  ;;  %v768_v45 = vld [vmem:[#allocation8 + $0x98] sm:$0xff] }
  0x72   :  { %2157 = vmatpush3.bf16.msra.mxu0 %v2385_v10  ;;  %2218 = vmatprep.subr.bf16.mxu1 %v2400_v51  ;;  %v757_v10 = vld [vmem:[#allocation8 + $0x40] sm:$0xff] }
  0x73   :  { %2270 = vmatprep.subr.bf16.mxu0 %v2386_v13 }
  0x75   :  { %2159 = vmatmul.mubr.bf16.vlgmr.msra.gmra.mxu0 %v190_v16  ;;  %2219 = vmatpush3.bf16.msra.mxu1 %v2400_v51  ;;  %v800_v16 = vpack.c.bf16 %v756_v9, %v755_v8  ;;  %v182_v51 = vld [vmem:[#allocation6 + $0x148] sm:$0xff]  ;;  %v187_v8 = vld [vmem:[#allocation6 + $0x170] sm:$0xff]  ;;  %v188_v9 = vld [vmem:[#allocation6 + $0x178] sm:$0xff] }
  0x76   :  { %2271 = vmatpush3.bf16.msra.mxu0 %v2386_v13  ;;  %2162 = vmatprep.mubr.bf16.mxu0 %v191_v17  ;;  %v168_v13 = vld [vmem:[#allocation6 + $0xd8] sm:$0xff]  ;;  %v801_v17 = vpack.c.bf16 %v758_v11, %v757_v10  ;;  %v209_v55 = vpack.c.bf16 %v182_v51, %v181_v50  ;;  %v1220_v10 = vld [vmem:[#allocation3] sm:$0xff]  ;;  %v1221_v11 = vld [vmem:[#allocation3 + $0x8] sm:$0xff]  ;;  %v212_v14 = vpack.c.bf16 %v188_v9, %v187_v8 }
  0x77   :  { %2272 = vmatprep.subr.bf16.mxu0 %v2387_v18  ;;  %2220 = vmatprep.subr.bf16.mxu1 %v2401_v58  ;;  %v1252_v15 = vpack.c.bf16 %v1221_v11, %v1220_v10  ;;  %v1242_v9 = vld [vmem:[#allocation3 + $0xb0] sm:$0xff]  ;;  %v1243_v10 = vld [vmem:[#allocation3 + $0xb8] sm:$0xff]  ;;  %v1244_v11 = vld [vmem:[#allocation3 + $0xc0] sm:$0xff] }
  0x79   :  { %2221 = vmatpush3.bf16.msra.mxu1 %v2401_v58  ;;  %v773_v58 = vld [vmem:[#allocation8 + $0xc0] sm:$0xff] }
  0x7a   :  { %2273 = vmatpush3.bf16.msra.mxu0 %v2387_v18  ;;  %v202_v18 = vpack.c.bf16 %v168_v13, %v167_v12 }
  0x7b   :  { %2274 = vmatprep.subr.bf16.mxu0 %v2388_v23 }
  0x7c   :  { %2223 = vmatmul.mubr.bf16.vlgmr.msra.gmra.mxu1 %v798_v4  ;;  %v775_v4 = vld [vmem:[#allocation8 + $0xd0] sm:$0xff] }
  0x7d   :  { %2163 = vmatmul.mubr.bf16.gmra.mxu0 %v192_v24  ;;  %2226 = vmatprep.mubr.bf16.mxu1 %v799_v5  ;;  %v171_v24 = vld [vmem:[#allocation6 + $0xf0] sm:$0xff]  ;;  %v776_v5 = vld [vmem:[#allocation8 + $0xd8] sm:$0xff] }
  0x7e   :  { %2166 = vmatprep.mubr.bf16.mxu0 %v193_v26  ;;  %2275 = vmatpush3.bf16.msra.mxu0 %v2388_v23  ;;  %v762_v23 = vld [vmem:[#allocation8 + $0x68] sm:$0xff]  ;;  %v173_v26 = vld [vmem:[#allocation6 + $0x100] sm:$0xff]  ;;  %v204_v30 = vpack.c.bf16 %v172_v25, %v171_v24  ;;  %v810_v12 = vpack.c.bf16 %v776_v5, %v775_v4 }
  0x7f   :  { %2276 = vmatprep.subr.bf16.mxu0 %v2389_v28  ;;  %v803_v29 = vpack.c.bf16 %v762_v23, %v761_v22  ;;  %v205_v31 = vpack.c.bf16 %v174_v27, %v173_v26  ;;  %v1224_v22 = vld [vmem:[#allocation3 + $0x20] sm:$0xff]  ;;  %v1225_v23 = vld [vmem:[#allocation3 + $0x28] sm:$0xff] }
  0x80   :  { %v1254_v27 = vpack.c.bf16 %v1225_v23, %v1224_v22  ;;  %v1240_v4 = vld [vmem:[#allocation3 + $0xa0] sm:$0xff]  ;;  %v1241_v5 = vld [vmem:[#allocation3 + $0xa8] sm:$0xff]  ;;  %v1251_v22 = vld [vmem:[#allocation3 + $0xf8] sm:$0xff] }
  0x81   :  { %v1262_v8 = vpack.c.bf16 %v1241_v5, %v1240_v4 }
  0x82   :  { %2277 = vmatpush3.bf16.msra.mxu0 %v2389_v28  ;;  %v802_v28 = vpack.c.bf16 %v760_v21, %v759_v20  ;;  %v1222_v20 = vld [vmem:[#allocation3 + $0x10] sm:$0xff]  ;;  %v1223_v21 = vld [vmem:[#allocation3 + $0x18] sm:$0xff] }
  0x83   :  { %2278 = vmatprep.subr.bf16.mxu0 %v2390_v34  ;;  %v1253_v26 = vpack.c.bf16 %v1223_v21, %v1222_v20  ;;  %v1250_v21 = vld [vmem:[#allocation3 + $0xf0] sm:$0xff] }
  0x84   :  { %2227 = vmatmul.mubr.bf16.gmra.mxu1 %v800_v16  ;;  %v779_v16 = vld [vmem:[#allocation8 + $0xf0] sm:$0xff]  ;;  %v1267_v23 = vpack.c.bf16 %v1251_v22, %v1250_v21 }
  0x85   :  { %2167 = vmatmul.mubr.bf16.gmra.mxu0 %v194_v35  ;;  %2230 = vmatprep.mubr.bf16.mxu1 %v801_v17  ;;  %v766_v35 = vld [vmem:[#allocation8 + $0x88] sm:$0xff]  ;;  %v780_v17 = vld [vmem:[#allocation8 + $0xf8] sm:$0xff] }
  0x86   :  { %2170 = vmatprep.mubr.bf16.mxu0 %v195_v37  ;;  %2279 = vmatpush3.bf16.msra.mxu0 %v2390_v34  ;;  %v765_v34 = vld [vmem:[#allocation8 + $0x80] sm:$0xff]  ;;  %v176_v37 = vld [vmem:[#allocation6 + $0x118] sm:$0xff]  ;;  %v812_v24 = vpack.c.bf16 %v780_v17, %v779_v16 }
  0x87   :  { %2280 = vmatprep.subr.bf16.mxu0 %v2391_v38  ;;  %v805_v41 = vpack.c.bf16 %v766_v35, %v765_v34  ;;  %v206_v42 = vpack.c.bf16 %v176_v37, %v175_v36  ;;  %v1228_v34 = vld [vmem:[#allocation3 + $0x40] sm:$0xff]  ;;  %v1229_v35 = vld [vmem:[#allocation3 + $0x48] sm:$0xff]  ;;  %v1247_v16 = vld [vmem:[#allocation3 + $0xd8] sm:$0xff] }
  0x88   :  { %v1248_v17 = vld [vmem:[#allocation3 + $0xe0] sm:$0xff] }
  0x8a   :  { %2281 = vmatpush3.bf16.msra.mxu0 %v2391_v38  ;;  %v177_v38 = vld [vmem:[#allocation6 + $0x120] sm:$0xff] }
  0x8b   :  { %2282 = vmatprep.subr.bf16.mxu0 %v2392_v44  ;;  %v207_v43 = vpack.c.bf16 %v178_v39, %v177_v38  ;;  %v1255_v38 = vpack.c.bf16 %v1227_v33, %v1226_v32  ;;  %v1256_v39 = vpack.c.bf16 %v1229_v35, %v1228_v34 }
  0x8c   :  { %2231 = vmatmul.mubr.bf16.gmra.mxu1 %v802_v28  ;;  %v783_v28 = vld [vmem:[#allocation8 + $0x110] sm:$0xff] }
  0x8d   :  { %2171 = vmatmul.mubr.bf16.gmra.mxu0 %v196_v46  ;;  %2234 = vmatprep.mubr.bf16.mxu1 %v803_v29  ;;  %v769_v46 = vld [vmem:[#allocation8 + $0xa0] sm:$0xff]  ;;  %v784_v29 = vld [vmem:[#allocation8 + $0x118] sm:$0xff] }
  0x8e   :  { %2174 = vmatprep.mubr.bf16.mxu0 %v197_v47  ;;  %2283 = vmatpush3.bf16.msra.mxu0 %v2392_v44  ;;  %v767_v44 = vld [vmem:[#allocation8 + $0x90] sm:$0xff]  ;;  %v770_v47 = vld [vmem:[#allocation8 + $0xa8] sm:$0xff]  ;;  %v814_v36 = vpack.c.bf16 %v784_v29, %v783_v28 }
  0x8f   :  { %2284 = vmatprep.subr.bf16.mxu0 %v2393_v48  ;;  %v806_v52 = vpack.c.bf16 %v768_v45, %v767_v44  ;;  %v807_v53 = vpack.c.bf16 %v770_v47, %v769_v46  ;;  %v1230_v44 = vld [vmem:[#allocation3 + $0x50] sm:$0xff]  ;;  %v1231_v45 = vld [vmem:[#allocation3 + $0x58] sm:$0xff]  ;;  %v1232_v46 = vld [vmem:[#allocation3 + $0x60] sm:$0xff] }
  0x90   :  { %v1233_v47 = vld [vmem:[#allocation3 + $0x68] sm:$0xff]  ;;  %v1257_v50 = vpack.c.bf16 %v1231_v45, %v1230_v44 }
  0x91   :  { %v1258_v51 = vpack.c.bf16 %v1233_v47, %v1232_v46 }
  0x92   :  { %2285 = vmatpush3.bf16.msra.mxu0 %v2393_v48  ;;  %v179_v48 = vld [vmem:[#allocation6 + $0x130] sm:$0xff] }
  0x93   :  { %v208_v54 = vpack.c.bf16 %v180_v49, %v179_v48 }
  0x94   :  { %2235 = vmatmul.mubr.bf16.gmra.mxu1 %v804_v40  ;;  %v787_v40 = vld [vmem:[#allocation8 + $0x130] sm:$0xff] }
  0x95   :  { %2175 = vmatmul.mubr.bf16.gmra.mxu0 %v198_v57  ;;  %2238 = vmatprep.mubr.bf16.mxu1 %v805_v41  ;;  %v772_v57 = vld [vmem:[#allocation8 + $0xb8] sm:$0xff] }
  0x96   :  { %2178 = vmatprep.mubr.bf16.mxu0 %v199_v59  ;;  %v774_v59 = vld [vmem:[#allocation8 + $0xc8] sm:$0xff]  ;;  %v808_v0 = vpack.c.bf16 %v772_v57, %v771_v56  ;;  %v788_v41 = vld [vmem:[#allocation8 + $0x138] sm:$0xff]  ;;  %v1234_v56 = vld [vmem:[#allocation3 + $0x70] sm:$0xff] }
  0x97   :  { %v809_v1 = vpack.c.bf16 %v774_v59, %v773_v58  ;;  %v816_v48 = vpack.c.bf16 %v788_v41, %v787_v40  ;;  %v1235_v57 = vld [vmem:[#allocation3 + $0x78] sm:$0xff]  ;;  %v1236_v58 = vld [vmem:[#allocation3 + $0x80] sm:$0xff]  ;;  %v1237_v59 = vld [vmem:[#allocation3 + $0x88] sm:$0xff] }
  0x98   :  { %v1259_v62 = vpack.c.bf16 %v1235_v57, %v1234_v56  ;;  %v1260_v63 = vpack.c.bf16 %v1237_v59, %v1236_v58 }
  0x9c   :  { %2239 = vmatmul.mubr.bf16.gmra.mxu1 %v806_v52  ;;  %v791_v52 = vld [vmem:[#allocation8 + $0x150] sm:$0xff] }
  0x9d   :  { %2179 = vmatmul.mubr.bf16.gmra.mxu0 %v200_v6  ;;  %2242 = vmatprep.mubr.bf16.mxu1 %v807_v53  ;;  %v777_v6 = vld [vmem:[#allocation8 + $0xe0] sm:$0xff]  ;;  %v792_v53 = vld [vmem:[#allocation8 + $0x158] sm:$0xff] }
  0x9e   :  { %2182 = vmatprep.mubr.bf16.mxu0 %v201_v7  ;;  %v778_v7 = vld [vmem:[#allocation8 + $0xe8] sm:$0xff]  ;;  %v818_v60 = vpack.c.bf16 %v792_v53, %v791_v52 }
  0x9f   :  { %v811_v13 = vpack.c.bf16 %v778_v7, %v777_v6 }
  0xa4   :  { %2243 = vmatmul.mubr.bf16.gmra.mxu1 %v808_v0  ;;  %v795_v0 = vld [vmem:[#allocation8 + $0x170] sm:$0xff] }
  0xa5   :  { %2183 = vmatmul.mubr.bf16.gmra.mxu0 %v202_v18  ;;  %2246 = vmatprep.mubr.bf16.mxu1 %v809_v1  ;;  %v781_v18 = vld [vmem:[#allocation8 + $0x100] sm:$0xff]  ;;  %v796_v1 = vld [vmem:[#allocation8 + $0x178] sm:$0xff] }
  0xa6   :  { %2186 = vmatprep.mubr.bf16.mxu0 %v203_v19  ;;  %v782_v19 = vld [vmem:[#allocation8 + $0x108] sm:$0xff]  ;;  %v820_v6 = vpack.c.bf16 %v796_v1, %v795_v0 }
  0xa7   :  { %v813_v25 = vpack.c.bf16 %v782_v19, %v781_v18  ;;  %v1249_v18 = vld [vmem:[#allocation3 + $0xe8] sm:$0xff] }
  0xa8   :  { %v1266_v20 = vpack.c.bf16 %v1249_v18, %v1248_v17 }
  0xac   :  { %2247 = vmatmul.mubr.bf16.gmra.mxu1 %v810_v12  ;;  %v1245_v12 = vld [vmem:[#allocation3 + $0xc8] sm:$0xff] }
  0xad   :  { %2187 = vmatmul.mubr.bf16.gmra.mxu0 %v204_v30  ;;  %2250 = vmatprep.mubr.bf16.mxu1 %v811_v13  ;;  %v785_v30 = vld [vmem:[#allocation8 + $0x120] sm:$0xff]  ;;  %v1263_v13 = vpack.c.bf16 %v1243_v10, %v1242_v9 }
  0xae   :  { %2190 = vmatprep.mubr.bf16.mxu0 %v205_v31  ;;  %v786_v31 = vld [vmem:[#allocation8 + $0x128] sm:$0xff] }
  0xaf   :  { %v815_v37 = vpack.c.bf16 %v786_v31, %v785_v30 }
  0xb4   :  { %2251 = vmatmul.mubr.bf16.gmra.mxu1 %v812_v24  ;;  %v2857_v24 = vld [vmem:[%s3625_s8] ss:$0 sm:$0xff] }
  0xb5   :  { %2191 = vmatmul.mubr.bf16.gmra.mxu0 %v206_v42  ;;  %2254 = vmatprep.mubr.bf16.mxu1 %v813_v25  ;;  %v789_v42 = vld [vmem:[#allocation8 + $0x140] sm:$0xff] }
  0xb6   :  { %2194 = vmatprep.mubr.bf16.mxu0 %v207_v43  ;;  %v790_v43 = vld [vmem:[#allocation8 + $0x148] sm:$0xff] }
  0xb7   :  { %v817_v49 = vpack.c.bf16 %v790_v43, %v789_v42 }
  0xbc   :  { %2255 = vmatmul.mubr.bf16.gmra.mxu1 %v814_v36 }
  0xbd   :  { %2195 = vmatmul.mubr.bf16.gmra.mxu0 %v208_v54  ;;  %2258 = vmatprep.mubr.bf16.mxu1 %v815_v37  ;;  %v793_v54 = vld [vmem:[#allocation8 + $0x160] sm:$0xff] }
  0xbe   :  { %2198 = vmatprep.mubr.bf16.mxu0 %v209_v55  ;;  %v794_v55 = vld [vmem:[#allocation8 + $0x168] sm:$0xff] }
  0xbf   :  { %v819_v61 = vpack.c.bf16 %v794_v55, %v793_v54 }
  0xc4   :  { %2259 = vmatmul.mubr.bf16.gmra.mxu1 %v816_v48 }
  0xc5   :  { %2199 = vmatmul.mubr.bf16.gmra.mxu0 %v210_v2  ;;  %2262 = vmatprep.mubr.bf16.mxu1 %v817_v49  ;;  %v1238_v2 = vld [vmem:[#allocation3 + $0x90] sm:$0xff] }
  0xc6   :  { %2202 = vmatprep.mubr.bf16.mxu0 %v211_v3  ;;  %v1239_v3 = vld [vmem:[#allocation3 + $0x98] sm:$0xff] }
  0xc7   :  { %v1261_v7 = vpack.c.bf16 %v1239_v3, %v1238_v2 }
  0xcc   :  { %2263 = vmatmul.mubr.bf16.gmra.mxu1 %v818_v60 }
  0xcd   :  { %2203 = vmatmul.mubr.bf16.gmra.mxu0 %v212_v14  ;;  %2266 = vmatprep.mubr.bf16.mxu1 %v819_v61  ;;  %v1264_v14 = vpack.c.bf16 %v1245_v12, %v1244_v11 }
  0xce   :  { %2286 = vmatprep.mubr.bf16.mxu0 %v1252_v15  ;;  %v1246_v15 = vld [vmem:[#allocation3 + $0xd0] sm:$0xff] }
  0xcf   :  { %v1265_v19 = vpack.c.bf16 %v1247_v16, %v1246_v15 }
  0xd4   :  { %2267 = vmatmul.mubr.bf16.gmra.mxu1 %v820_v6 }
  0xd5   :  { %2287 = vmatmul.mubr.bf16.vlgmr.msra.gmra.mxu0 %v1253_v26 }
  0xd6   :  { %2290 = vmatprep.mubr.bf16.mxu0 %v1254_v27 }
  0xdd   :  { %2291 = vmatmul.mubr.bf16.gmra.mxu0 %v1255_v38 }
  0xde   :  { %2294 = vmatprep.mubr.bf16.mxu0 %v1256_v39 }
  0xe5   :  { %2295 = vmatmul.mubr.bf16.gmra.mxu0 %v1257_v50 }
  0xe6   :  { %2298 = vmatprep.mubr.bf16.mxu0 %v1258_v51 }
  0xed   :  { %2299 = vmatmul.mubr.bf16.gmra.mxu0 %v1259_v62 }
  0xee   :  { %2302 = vmatprep.mubr.bf16.mxu0 %v1260_v63 }
  0xf5   :  { %2303 = vmatmul.mubr.bf16.gmra.mxu0 %v1261_v7 }
  0xf6   :  { %2306 = vmatprep.mubr.bf16.mxu0 %v1262_v8 }
  0xfd   :  { %2307 = vmatmul.mubr.bf16.gmra.mxu0 %v1263_v13 }
  0xfe   :  { %2310 = vmatprep.mubr.bf16.mxu0 %v1264_v14 }
 0x105   :  { %2311 = vmatmul.mubr.bf16.gmra.mxu0 %v1265_v19 }
 0x106   :  { %2314 = vmatprep.mubr.bf16.mxu0 %v1266_v20 }
 0x10d   :  { %2315 = vmatmul.mubr.bf16.gmra.mxu0 %v1267_v23 }
 0x135   :  { %v2160_v25 = vpop.f32.mrf.mxu0 }
 0x136   :  { %v2860_v26 = vadd.f32 %v2160_v25, %v2857_v24 }
 0x137   :  { %v318_v27 = vpop.f32.mrf.mxu0 }
 0x138   :  { %v2863_v28 = vadd.f32 %v2857_v24, %v318_v27  ;;  %v511_v29 = vmul.f32 %v2860_v26, %v2860_v26 }
 0x139   :  { %v2161_v30 = vpop.f32.mrf.mxu0 }
 0x13a   :  { %v2868_v31 = vadd.f32 %v2161_v30, %v2857_v24  ;;  %561 = vadd.xlane.f32.xlu1 %v511_v29  ;;  %v509_v32 = vmul.f32 %v2863_v28, %v2863_v28 }
 0x13b   :  { %v321_v33 = vpop.f32.mrf.mxu0 }
 0x13c   :  { %v2873_v34 = vadd.f32 %v2857_v24, %v321_v33  ;;  %557 = vadd.xlane.f32.xlu0 %v509_v32  ;;  %v512_v35 = vmul.f32 %v2868_v31, %v2868_v31 }
 0x13d   :  { %v2164_v36 = vpop.f32.mrf.mxu0 }
 0x13e   :  { %v2878_v37 = vadd.f32 %v2164_v36, %v2857_v24  ;;  %563 = vadd.xlane.f32.xlu1 %v512_v35  ;;  %v510_v38 = vmul.f32 %v2873_v34, %v2873_v34 }
 0x13f   :  { %v334_v39 = vpop.f32.mrf.mxu0 }
 0x140   :  { %559 = vadd.xlane.f32.xlu0 %v510_v38  ;;  %v2883_v41 = vadd.f32 %v2857_v24, %v334_v39  ;;  %v515_v43 = vmul.f32 %v2878_v37, %v2878_v37 }
 0x141   :  { %v2165_v40 = vpop.f32.mrf.mxu0 }
 0x142   :  { %v2886_v42 = vadd.f32 %v2165_v40, %v2857_v24  ;;  %v513_v49 = vmul.f32 %v2883_v41, %v2883_v41  ;;  %v2402_v40 = vld [vmem:[#allocation14 + $0x38] sm:$0xff]  }
 0x143   :  { %v337_v44 = vpop.f32.mrf.mxu0  ;;  %2318 = vmatprep.subr.bf16.mxu1 %v2402_v40 }
 0x144   :  { %v2891_v45 = vadd.f32 %v2857_v24, %v337_v44  ;;  %569 = vadd.xlane.f32.xlu0 %v515_v43  ;;  %v516_v46 = vmul.f32 %v2886_v42, %v2886_v42  ;;  %2319 = vmatpush3.bf16.msra.mxu1 %v2402_v40 }
 0x145   :  { %v2168_v47 = vpop.f32.mrf.mxu0 }
 0x146   :  { %v2896_v48 = vadd.f32 %v2168_v47, %v2857_v24  ;;  %571 = vadd.xlane.f32.xlu1 %v516_v46  ;;  %v514_v51 = vmul.f32 %v2891_v45, %v2891_v45 }
 0x147   :  { %v350_v50 = vpop.f32.mrf.mxu0 }
 0x148   :  { %565 = vadd.xlane.f32.xlu0 %v513_v49  ;;  %v2903_v53 = vadd.f32 %v2857_v24, %v350_v50  ;;  %v519_v55 = vmul.f32 %v2896_v48, %v2896_v48 }
 0x149   :  { %v2169_v52 = vpop.f32.mrf.mxu0 }
 0x14a   :  { %v2906_v54 = vadd.f32 %v2169_v52, %v2857_v24  ;;  %567 = vadd.xlane.f32.xlu1 %v514_v51  ;;  %v517_v61 = vmul.f32 %v2903_v53, %v2903_v53 }
 0x14b   :  { %v353_v56 = vpop.f32.mrf.mxu0 }
 0x14c   :  { %v2911_v57 = vadd.f32 %v2857_v24, %v353_v56  ;;  %577 = vadd.xlane.f32.xlu0 %v519_v55  ;;  %v520_v58 = vmul.f32 %v2906_v54, %v2906_v54 }
 0x14d   :  { %v2172_v59 = vpop.f32.mrf.mxu0 }
 0x14e   :  { %v2916_v60 = vadd.f32 %v2172_v59, %v2857_v24  ;;  %579 = vadd.xlane.f32.xlu1 %v520_v58  ;;  %v518_v63 = vmul.f32 %v2911_v57, %v2911_v57 }
 0x14f   :  { %v366_v62 = vpop.f32.mrf.mxu0 }
 0x150   :  { %573 = vadd.xlane.f32.xlu0 %v517_v61  ;;  %v2923_v1 = vadd.f32 %v2857_v24, %v366_v62  ;;  %v523_v3 = vmul.f32 %v2916_v60, %v2916_v60 }
 0x151   :  { %v2173_v0 = vpop.f32.mrf.mxu0 }
 0x152   :  { %v2926_v2 = vadd.f32 %v2173_v0, %v2857_v24  ;;  %575 = vadd.xlane.f32.xlu1 %v518_v63  ;;  %v521_v9 = vmul.f32 %v2923_v1, %v2923_v1 }
 0x153   :  { %v369_v4 = vpop.f32.mrf.mxu0 }
 0x154   :  { %v2931_v5 = vadd.f32 %v2857_v24, %v369_v4  ;;  %585 = vadd.xlane.f32.xlu0 %v523_v3  ;;  %v524_v6 = vmul.f32 %v2926_v2, %v2926_v2 }
 0x155   :  { %v2176_v7 = vpop.f32.mrf.mxu0 }
 0x156   :  { %v2936_v8 = vadd.f32 %v2176_v7, %v2857_v24  ;;  %587 = vadd.xlane.f32.xlu1 %v524_v6  ;;  %v522_v11 = vmul.f32 %v2931_v5, %v2931_v5  ;;  %v3010_v6 = vpop.f32.mrf.mxu1 }
 0x157   :  { %v382_v10 = vpop.f32.mrf.mxu0 }
 0x158   :  { %581 = vadd.xlane.f32.xlu0 %v521_v9  ;;  %v2943_v13 = vadd.f32 %v2857_v24, %v382_v10  ;;  %v527_v15 = vmul.f32 %v2936_v8, %v2936_v8 }
 0x159   :  { %v2177_v12 = vpop.f32.mrf.mxu0 }
 0x15a   :  { %v2946_v14 = vadd.f32 %v2177_v12, %v2857_v24  ;;  %583 = vadd.xlane.f32.xlu1 %v522_v11  ;;  %v525_v21 = vmul.f32 %v2943_v13, %v2943_v13  ;;  %v2403_v11 = vld [vmem:[#allocation14 + $0x30] sm:$0xff]  }
 0x15b   :  { %v385_v16 = vpop.f32.mrf.mxu0  ;;  %2320 = vmatprep.subr.bf16.mxu1 %v2403_v11 }
 0x15c   :  { %3689 = vst [vmem:[#allocation21_spill] sm:$0xff] %v2946_v14  ;;  %v2951_v17 = vadd.f32 %v2857_v24, %v385_v16  ;;  %593 = vadd.xlane.f32.xlu0 %v527_v15  ;;  %v528_v18 = vmul.f32 %v2946_v14, %v2946_v14  ;;  %2321 = vmatpush3.bf16.msra.mxu1 %v2403_v11 }
 0x15d   :  { %v2180_v19 = vpop.f32.mrf.mxu0 }
 0x15e   :  { %v2956_v20 = vadd.f32 %v2180_v19, %v2857_v24  ;;  %595 = vadd.xlane.f32.xlu1 %v528_v18  ;;  %v526_v23 = vmul.f32 %v2951_v17, %v2951_v17  ;;  %v3022_v18 = vpop.f32.mrf.mxu1 }
 0x15f   :  { %v398_v22 = vpop.f32.mrf.mxu0 }
 0x160   :  { %3690 = vst [vmem:[#allocation22_spill] sm:$0xff] %v2956_v20  ;;  %589 = vadd.xlane.f32.xlu0 %v525_v21  ;;  %v2963_v27 = vadd.f32 %v2857_v24, %v398_v22  ;;  %v531_v30 = vmul.f32 %v2956_v20, %v2956_v20 }
 0x161   :  { %v2181_v25 = vpop.f32.mrf.mxu0 }
 0x162   :  { %v2966_v29 = vadd.f32 %v2181_v25, %v2857_v24  ;;  %591 = vadd.xlane.f32.xlu1 %v526_v23  ;;  %v529_v39 = vmul.f32 %v2963_v27, %v2963_v27 }
 0x163   :  { %v401_v32 = vpop.f32.mrf.mxu0 }
 0x164   :  { %3691 = vst [vmem:[#allocation23_spill] sm:$0xff] %v2966_v29  ;;  %v2971_v33 = vadd.f32 %v2857_v24, %v401_v32  ;;  %601 = vadd.xlane.f32.xlu0 %v531_v30  ;;  %v532_v35 = vmul.f32 %v2966_v29, %v2966_v29  ;;  %v3034_v32 = vpop.f32.mrf.mxu1 }
 0x165   :  { %v2184_v36 = vpop.f32.mrf.mxu0 }
 0x166   :  { %3692 = vst [vmem:[#allocation24_spill] sm:$0xff] %v2971_v33  ;;  %v2976_v38 = vadd.f32 %v2184_v36, %v2857_v24  ;;  %603 = vadd.xlane.f32.xlu1 %v532_v35  ;;  %v530_v44 = vmul.f32 %v2971_v33, %v2971_v33 }
 0x167   :  { %v414_v43 = vpop.f32.mrf.mxu0 }
 0x168   :  { %3693 = vst [vmem:[#allocation25_spill] sm:$0xff] %v2976_v38  ;;  %597 = vadd.xlane.f32.xlu0 %v529_v39  ;;  %v2983_v47 = vadd.f32 %v2857_v24, %v414_v43  ;;  %v535_v50 = vmul.f32 %v2976_v38, %v2976_v38 }
 0x169   :  { %v2185_v46 = vpop.f32.mrf.mxu0 }
 0x16a   :  { %3694 = vst [vmem:[#allocation26_spill] sm:$0xff] %v2983_v47  ;;  %v2986_v49 = vadd.f32 %v2185_v46, %v2857_v24  ;;  %599 = vadd.xlane.f32.xlu1 %v530_v44  ;;  %v533_v59 = vmul.f32 %v2983_v47, %v2983_v47  ;;  %v3046_v46 = vpop.f32.mrf.mxu1 }
 0x16b   :  { %v417_v51 = vpop.f32.mrf.mxu0 }
 0x16c   :  { %3695 = vst [vmem:[#allocation27_spill] sm:$0xff] %v2986_v49  ;;  %v2991_v52 = vadd.f32 %v2857_v24, %v417_v51  ;;  %609 = vadd.xlane.f32.xlu0 %v535_v50  ;;  %v536_v55 = vmul.f32 %v2986_v49, %v2986_v49  ;;  %v2404_v51 = vld [vmem:[#allocation14 + $0x28] sm:$0xff]  }
 0x16d   :  { %v2188_v56 = vpop.f32.mrf.mxu0  ;;  %2322 = vmatprep.subr.bf16.mxu1 %v2404_v51 }
 0x16e   :  { %3696 = vst [vmem:[#allocation28_spill] sm:$0xff] %v2991_v52  ;;  %v2996_v58 = vadd.f32 %v2188_v56, %v2857_v24  ;;  %611 = vadd.xlane.f32.xlu1 %v536_v55  ;;  %v534_v62 = vmul.f32 %v2991_v52, %v2991_v52  ;;  %2323 = vmatpush3.bf16.msra.mxu1 %v2404_v51 }
 0x16f   :  { %v430_v61 = vpop.f32.mrf.mxu0 }
 0x170   :  { %3697 = vst [vmem:[#allocation29_spill] sm:$0xff] %v2996_v58  ;;  %605 = vadd.xlane.f32.xlu0 %v533_v59  ;;  %v3003_v0 = vadd.f32 %v2857_v24, %v430_v61  ;;  %v539_v4 = vmul.f32 %v2996_v58, %v2996_v58 }
 0x171   :  { %v2189_v63 = vpop.f32.mrf.mxu0 }
 0x172   :  { %3698 = vst [vmem:[#allocation30_spill] sm:$0xff] %v3003_v0  ;;  %v3006_v3 = vadd.f32 %v2189_v63, %v2857_v24  ;;  %607 = vadd.xlane.f32.xlu1 %v534_v62  ;;  %v537_v16 = vmul.f32 %v3003_v0, %v3003_v0  ;;  %v3058_v63 = vpop.f32.mrf.mxu1 }
 0x173   :  { %v433_v7 = vpop.f32.mrf.mxu0 }
 0x174   :  { %3699 = vst [vmem:[#allocation31_spill] sm:$0xff] %v3006_v3  ;;  %v3013_v9 = vadd.f32 %v2857_v24, %v433_v7  ;;  %617 = vadd.xlane.f32.xlu0 %v539_v4  ;;  %v540_v10 = vmul.f32 %v3006_v3, %v3006_v3 }
 0x175   :  { %v2192_v12 = vpop.f32.mrf.mxu0 }
 0x176   :  { %3700 = vst [vmem:[#allocation32_spill] sm:$0xff] %v3013_v9  ;;  %v3018_v15 = vadd.f32 %v2192_v12, %v2857_v24  ;;  %619 = vadd.xlane.f32.xlu1 %v540_v10  ;;  %v538_v21 = vmul.f32 %v3013_v9, %v3013_v9 }
 0x177   :  { %v446_v19 = vpop.f32.mrf.mxu0 }
 0x178   :  { %3701 = vst [vmem:[#allocation33_spill] sm:$0xff] %v3018_v15  ;;  %613 = vadd.xlane.f32.xlu0 %v537_v16  ;;  %v3027_v23 = vadd.f32 %v2857_v24, %v446_v19  ;;  %v543_v30 = vmul.f32 %v3018_v15, %v3018_v15  ;;  %v3070_v19 = vpop.f32.mrf.mxu1 }
 0x179   :  { %v2193_v22 = vpop.f32.mrf.mxu0 }
 0x17a   :  { %3702 = vst [vmem:[#allocation34_spill] sm:$0xff] %v3027_v23  ;;  %v3030_v25 = vadd.f32 %v2193_v22, %v2857_v24  ;;  %615 = vadd.xlane.f32.xlu1 %v538_v21  ;;  %v541_v44 = vmul.f32 %v3027_v23, %v3027_v23 }
 0x17b   :  { %v449_v35 = vpop.f32.mrf.mxu0 }
 0x17c   :  { %3703 = vst [vmem:[#allocation35_spill] sm:$0xff] %v3030_v25  ;;  %v3037_v36 = vadd.f32 %v2857_v24, %v449_v35  ;;  %625 = vadd.xlane.f32.xlu0 %v543_v30  ;;  %v544_v39 = vmul.f32 %v3030_v25, %v3030_v25 }
 0x17d   :  { %v2196_v40 = vpop.f32.mrf.mxu0 }
 0x17e   :  { %3704 = vst [vmem:[#allocation36_spill] sm:$0xff] %v3037_v36  ;;  %v3042_v43 = vadd.f32 %v2196_v40, %v2857_v24  ;;  %627 = vadd.xlane.f32.xlu1 %v544_v39  ;;  %v542_v55 = vmul.f32 %v3037_v36, %v3037_v36 }
 0x17f   :  { %v462_v50 = vpop.f32.mrf.mxu0 }
 0x180   :  { %3705 = vst [vmem:[#allocation37_spill] sm:$0xff] %v3042_v43  ;;  %621 = vadd.xlane.f32.xlu0 %v541_v44  ;;  %v3051_v59 = vadd.f32 %v2857_v24, %v462_v50  ;;  %v547_v62 = vmul.f32 %v3042_v43, %v3042_v43  ;;  %v3082_v44 = vpop.f32.mrf.mxu1 }
 0x181   :  { %v2197_v56 = vpop.f32.mrf.mxu0 }
 0x182   :  { %3706 = vst [vmem:[#allocation38_spill] sm:$0xff] %v3051_v59  ;;  %v3054_v61 = vadd.f32 %v2197_v56, %v2857_v24  ;;  %623 = vadd.xlane.f32.xlu1 %v542_v55  ;;  %v545_v16 = vmul.f32 %v3051_v59, %v3051_v59  ;;  %v2405_v56 = vld [vmem:[#allocation14 + $0x20] sm:$0xff]  }
 0x183   :  { %v465_v4 = vpop.f32.mrf.mxu0  ;;  %2324 = vmatprep.subr.bf16.mxu1 %v2405_v56 }
 0x184   :  { %3707 = vst [vmem:[#allocation39_spill] sm:$0xff] %v3054_v61  ;;  %v3061_v7 = vadd.f32 %v2857_v24, %v465_v4  ;;  %633 = vadd.xlane.f32.xlu0 %v547_v62  ;;  %v548_v10 = vmul.f32 %v3054_v61, %v3054_v61  ;;  %2325 = vmatpush3.bf16.msra.mxu1 %v2405_v56 }
 0x185   :  { %v2200_v11 = vpop.f32.mrf.mxu0 }
 0x186   :  { %3708 = vst [vmem:[#allocation40_spill] sm:$0xff] %v3061_v7  ;;  %v3066_v12 = vadd.f32 %v2200_v11, %v2857_v24  ;;  %635 = vadd.xlane.f32.xlu1 %v548_v10  ;;  %v546_v22 = vmul.f32 %v3061_v7, %v3061_v7  ;;  %v3094_v11 = vpop.f32.mrf.mxu1 }
 0x187   :  { %v478_v21 = vpop.f32.mrf.mxu0 }
 0x188   :  { %3709 = vst [vmem:[#allocation41_spill] sm:$0xff] %v3066_v12  ;;  %629 = vadd.xlane.f32.xlu0 %v545_v16  ;;  %v3075_v35 = vadd.f32 %v2857_v24, %v478_v21  ;;  %v551_v40 = vmul.f32 %v3066_v12, %v3066_v12  ;;  %v2406_v12 = vld [vmem:[#allocation14 + $0x18] sm:$0xff]  }
 0x189   :  { %v2201_v30 = vpop.f32.mrf.mxu0  ;;  %2326 = vmatprep.subr.bf16.mxu1 %v2406_v12 }
 0x18a   :  { %3710 = vst [vmem:[#allocation42_spill] sm:$0xff] %v3075_v35  ;;  %v3078_v39 = vadd.f32 %v2201_v30, %v2857_v24  ;;  %631 = vadd.xlane.f32.xlu1 %v546_v22  ;;  %v549_v10 = vmul.f32 %v3075_v35, %v3075_v35  ;;  %2327 = vmatpush3.bf16.msra.mxu1 %v2406_v12 }
 0x18b   :  { %v481_v50 = vpop.f32.mrf.mxu0 }
 0x18c   :  { %3711 = vst [vmem:[#allocation43_spill] sm:$0xff] %v3078_v39  ;;  %v3085_v51 = vadd.f32 %v2857_v24, %v481_v50  ;;  %641 = vadd.xlane.f32.xlu0 %v551_v40  ;;  %v552_v55 = vmul.f32 %v3078_v39, %v3078_v39 }
 0x18d   :  { %v2204_v62 = vpop.f32.mrf.mxu0 }
 0x18e   :  { %3712 = vst [vmem:[#allocation44_spill] sm:$0xff] %v3085_v51  ;;  %v3090_v4 = vadd.f32 %v2204_v62, %v2857_v24  ;;  %643 = vadd.xlane.f32.xlu1 %v552_v55  ;;  %v550_v21 = vmul.f32 %v3085_v51, %v3085_v51  ;;  %v3106_v55 = vpop.f32.mrf.mxu1 }
 0x18f   :  { %v494_v16 = vpop.f32.mrf.mxu0 }
 0x190   :  { %3713 = vst [vmem:[#allocation45_spill] sm:$0xff] %v3090_v4  ;;  %637 = vadd.xlane.f32.xlu0 %v549_v10  ;;  %v3099_v30 = vadd.f32 %v2857_v24, %v494_v16  ;;  %v555_v50 = vmul.f32 %v3090_v4, %v3090_v4 }
 0x191   :  { %v2205_v22 = vpop.f32.mrf.mxu0 }
 0x192   :  { %3714 = vst [vmem:[#allocation46_spill] sm:$0xff] %v3099_v30  ;;  %v3102_v40 = vadd.f32 %v2205_v22, %v2857_v24  ;;  %639 = vadd.xlane.f32.xlu1 %v550_v21  ;;  %v553_v16 = vmul.f32 %v3099_v30, %v3099_v30  ;;  %v3115_v22 = vpop.f32.mrf.mxu1  ;;  %v3120_v21 = vld [vmem:[%s3624_s7] ss:$0 sm:$0xff] }
 0x193   :  { %v497_v62 = vpop.f32.mrf.mxu0 }
 0x194   :  { %3715 = vst [vmem:[#allocation47_spill] sm:$0xff] %v3102_v40  ;;  %v3109_v56 = vadd.f32 %v2857_v24, %v497_v62  ;;  %649 = vadd.xlane.f32.xlu0 %v555_v50  ;;  %v556_v10 = vmul.f32 %v3102_v40, %v3102_v40  ;;  %v3132_v30 = vpop.f32.mrf.mxu1 }
 0x195   :  { %v2288_v39 = vpop.f32.mrf.mxu0 }
 0x196   :  { %3716 = vst [vmem:[#allocation48_spill] sm:$0xff] %v3109_v56  ;;  %651 = vadd.xlane.f32.xlu1 %v556_v10  ;;  %v554_v50 = vmul.f32 %v3109_v56, %v3109_v56  ;;  %v3128_v10 = vadd.f32 %v2288_v39, %v3120_v21  ;;  %v3144_v35 = vpop.f32.mrf.mxu1 }
 0x197   :  { %v1373_v4 = vpop.f32.mrf.mxu0 }
 0x198   :  { %v3123_v24 = vadd.f32 %v3120_v21, %v1373_v4  ;;  %645 = vadd.xlane.f32.xlu0 %v553_v16  ;;  %3718 = vst [vmem:[#allocation50_spill] sm:$0xff] %v3128_v10  ;;  %v3156_v61 = vpop.f32.mrf.mxu1 }
 0x199   :  { %v2289_v62 = vpop.f32.mrf.mxu0 }
 0x19a   :  { %3717 = vst [vmem:[#allocation49_spill] sm:$0xff] %v3123_v24  ;;  %647 = vadd.xlane.f32.xlu1 %v554_v50  ;;  %v1500_v40 = vmul.f32 %v3123_v24, %v3123_v24  ;;  %v3138_v56 = vadd.f32 %v2289_v62, %v3120_v21  ;;  %v1502_v50 = vmul.f32 %v3128_v10, %v3128_v10 }
 0x19b   :  { %v1376_v51 = vpop.f32.mrf.mxu0 }
 0x19c   :  { %v3135_v4 = vadd.f32 %v3120_v21, %v1376_v51  ;;  %1532 = vadd.xlane.f32.xlu0 %v1500_v40  ;;  %3720 = vst [vmem:[#allocation52_spill] sm:$0xff] %v3138_v56  ;;  %v1503_v62 = vmul.f32 %v3138_v56, %v3138_v56 }
 0x19d   :  { %v2292_v16 = vpop.f32.mrf.mxu0 }
 0x19e   :  { %3719 = vst [vmem:[#allocation51_spill] sm:$0xff] %v3135_v4  ;;  %v1501_v39 = vmul.f32 %v3135_v4, %v3135_v4  ;;  %v3150_v40 = vadd.f32 %v2292_v16, %v3120_v21 }
 0x19f   :  { %v1389_v24 = vpop.f32.mrf.mxu0 }
 0x1a0   :  { %v3147_v12 = vadd.f32 %v3120_v21, %v1389_v24  ;;  %1534 = vadd.xlane.f32.xlu1 %v1501_v39  ;;  %1536 = vadd.xlane.f32.xlu0 %v1502_v50  ;;  %3722 = vst [vmem:[#allocation54_spill] sm:$0xff] %v3150_v40  ;;  %v2407_v24 = vld [vmem:[#allocation14 + $0x10] sm:$0xff]   ;;  %v1506_v56 = vmul.f32 %v3150_v40, %v3150_v40 }
 0x1a1   :  { %v2293_v51 = vpop.f32.mrf.mxu0  ;;  %2328 = vmatprep.subr.bf16.mxu1 %v2407_v24 }
 0x1a2   :  { %3721 = vst [vmem:[#allocation53_spill] sm:$0xff] %v3147_v12  ;;  %v1504_v4 = vmul.f32 %v3147_v12, %v3147_v12  ;;  %v3162_v50 = vadd.f32 %v2293_v51, %v3120_v21  ;;  %v3168_v12 = vpop.f32.mrf.mxu1  ;;  %2329 = vmatpush3.bf16.msra.mxu1 %v2407_v24 }
 0x1a3   :  { %v1392_v10 = vpop.f32.mrf.mxu0 }
 0x1a4   :  { %v3159_v43 = vadd.f32 %v3120_v21, %v1392_v10  ;;  %1538 = vadd.xlane.f32.xlu1 %v1503_v62  ;;  %1540 = vadd.xlane.f32.xlu0 %v1504_v4  ;;  %3724 = vst [vmem:[#allocation56_spill] sm:$0xff] %v3162_v50  ;;  %v1507_v62 = vmul.f32 %v3162_v50, %v3162_v50 }
 0x1a5   :  { %v2296_v39 = vpop.f32.mrf.mxu0 }
 0x1a6   :  { %3723 = vst [vmem:[#allocation55_spill] sm:$0xff] %v3159_v43  ;;  %v1505_v16 = vmul.f32 %v3159_v43, %v3159_v43  ;;  %v3174_v51 = vadd.f32 %v2296_v39, %v3120_v21  ;;  %v3180_v43 = vpop.f32.mrf.mxu1 }
 0x1a7   :  { %v1405_v7 = vpop.f32.mrf.mxu0 }
 0x1a8   :  { %v3171_v10 = vadd.f32 %v3120_v21, %v1405_v7  ;;  %1542 = vadd.xlane.f32.xlu1 %v1505_v16  ;;  %1544 = vadd.xlane.f32.xlu0 %v1506_v56  ;;  %3726 = vst [vmem:[#allocation58_spill] sm:$0xff] %v3174_v51  ;;  %v1510_v16 = vmul.f32 %v3174_v51, %v3174_v51  ;;  %v3192_v50 = vpop.f32.mrf.mxu1 }
 0x1a9   :  { %v2297_v4 = vpop.f32.mrf.mxu0 }
 0x1aa   :  { %3725 = vst [vmem:[#allocation57_spill] sm:$0xff] %v3171_v10  ;;  %v1508_v40 = vmul.f32 %v3171_v10, %v3171_v10  ;;  %v3186_v56 = vadd.f32 %v2297_v4, %v3120_v21 }
 0x1ab   :  { %v1408_v25 = vpop.f32.mrf.mxu0 }
 0x1ac   :  { %v3183_v24 = vadd.f32 %v3120_v21, %v1408_v25  ;;  %1546 = vadd.xlane.f32.xlu1 %v1507_v62  ;;  %1548 = vadd.xlane.f32.xlu0 %v1508_v40  ;;  %3728 = vst [vmem:[#allocation60_spill] sm:$0xff] %v3186_v56  ;;  %v1511_v4 = vmul.f32 %v3186_v56, %v3186_v56 }
 0x1ad   :  { %v2300_v7 = vpop.f32.mrf.mxu0 }
 0x1ae   :  { %3727 = vst [vmem:[#allocation59_spill] sm:$0xff] %v3183_v24  ;;  %v1509_v39 = vmul.f32 %v3183_v24, %v3183_v24  ;;  %v3198_v40 = vadd.f32 %v2300_v7, %v3120_v21  ;;  %v3204_v24 = vpop.f32.mrf.mxu1 }
 0x1af   :  { %v1421_v10 = vpop.f32.mrf.mxu0 }
 0x1b0   :  { %v3195_v59 = vadd.f32 %v3120_v21, %v1421_v10  ;;  %1550 = vadd.xlane.f32.xlu1 %v1509_v39  ;;  %1552 = vadd.xlane.f32.xlu0 %v1510_v16  ;;  %3730 = vst [vmem:[#allocation62_spill] sm:$0xff] %v3198_v40  ;;  %v1514_v16 = vmul.f32 %v3198_v40, %v3198_v40  ;;  %v3216_v56 = vpop.f32.mrf.mxu1 }
 0x1b1   :  { %v2301_v25 = vpop.f32.mrf.mxu0 }
 0x1b2   :  { %3729 = vst [vmem:[#allocation61_spill] sm:$0xff] %v3195_v59  ;;  %v1512_v62 = vmul.f32 %v3195_v59, %v3195_v59  ;;  %v3210_v39 = vadd.f32 %v2301_v25, %v3120_v21  ;;  %v3228_v40 = vpop.f32.mrf.mxu1 }
 0x1b3   :  { %v1424_v51 = vpop.f32.mrf.mxu0 }
 0x1b4   :  { %v3207_v15 = vadd.f32 %v3120_v21, %v1424_v51  ;;  %1554 = vadd.xlane.f32.xlu1 %v1511_v4  ;;  %1556 = vadd.xlane.f32.xlu0 %v1512_v62  ;;  %3732 = vst [vmem:[#allocation64_spill] sm:$0xff] %v3210_v39  ;;  %v2408_v4 = vld [vmem:[#allocation14 + $0x8] sm:$0xff]   ;;  %v1515_v25 = vmul.f32 %v3210_v39, %v3210_v39  ;;  %v3240_v23 = vpop.f32.mrf.mxu1 }
 0x1b5   :  { %v2304_v10 = vpop.f32.mrf.mxu0  ;;  %2330 = vmatprep.subr.bf16.mxu1 %v2408_v4 }
 0x1b6   :  { %3731 = vst [vmem:[#allocation63_spill] sm:$0xff] %v3207_v15  ;;  %v1513_v7 = vmul.f32 %v3207_v15, %v3207_v15  ;;  %v3222_v62 = vadd.f32 %v2304_v10, %v3120_v21  ;;  %2331 = vmatpush3.bf16.msra.mxu1 %v2408_v4 }
 0x1b7   :  { %v1437_v59 = vpop.f32.mrf.mxu0 }
 0x1b8   :  { %v3219_v36 = vadd.f32 %v3120_v21, %v1437_v59  ;;  %1558 = vadd.xlane.f32.xlu1 %v1513_v7  ;;  %1560 = vadd.xlane.f32.xlu0 %v1514_v16  ;;  %3734 = vst [vmem:[#allocation66_spill] sm:$0xff] %v3222_v62  ;;  %v2409_v16 = vld [vmem:[#allocation14] sm:$0xff]  }
 0x1b9   :  { %v2305_v51 = vpop.f32.mrf.mxu0  ;;  %2332 = vmatprep.subr.bf16.mxu1 %v2409_v16 }
 0x1ba   :  { %3733 = vst [vmem:[#allocation65_spill] sm:$0xff] %v3219_v36  ;;  %v1516_v15 = vmul.f32 %v3219_v36, %v3219_v36  ;;  %v3234_v10 = vadd.f32 %v2305_v51, %v3120_v21  ;;  %v1518_v36 = vmul.f32 %v3222_v62, %v3222_v62  ;;  %2333 = vmatpush3.bf16.msra.mxu1 %v2409_v16  ;;  %v3252_v62 = vpop.f32.mrf.mxu1 }
 0x1bb   :  { %v1440_v3 = vpop.f32.mrf.mxu0  ;;  %3739 = vst [vmem:[#allocation71_spill] sm:$0xff] %v3252_v62 }
 0x1bc   :  { %v3231_v59 = vadd.f32 %v3120_v21, %v1440_v3  ;;  %1562 = vadd.xlane.f32.xlu1 %v1515_v25  ;;  %1564 = vadd.xlane.f32.xlu0 %v1516_v15  ;;  %3736 = vst [vmem:[#allocation68_spill] sm:$0xff] %v3234_v10  ;;  %v1519_v4 = vmul.f32 %v3234_v10, %v3234_v10  ;;  %v3264_v10 = vpop.f32.mrf.mxu1 }
 0x1bd   :  { %v2308_v7 = vpop.f32.mrf.mxu0 }
 0x1be   :  { %3735 = vst [vmem:[#allocation67_spill] sm:$0xff] %v3231_v59  ;;  %v1517_v39 = vmul.f32 %v3231_v59, %v3231_v59  ;;  %v3246_v51 = vadd.f32 %v2308_v7, %v3120_v21 }
 0x1bf   :  { %v1453_v58 = vpop.f32.mrf.mxu0 }
 0x1c0   :  { %v3243_v3 = vadd.f32 %v3120_v21, %v1453_v58  ;;  %1566 = vadd.xlane.f32.xlu1 %v1517_v39  ;;  %1568 = vadd.xlane.f32.xlu0 %v1518_v36  ;;  %3738 = vst [vmem:[#allocation70_spill] sm:$0xff] %v3246_v51 }
 0x1c1   :  { %v2309_v15 = vpop.f32.mrf.mxu0 }
 0x1c2   :  { %3737 = vst [vmem:[#allocation69_spill] sm:$0xff] %v3243_v3  ;;  %v1520_v25 = vmul.f32 %v3243_v3, %v3243_v3  ;;  %v3258_v7 = vadd.f32 %v2309_v15, %v3120_v21  ;;  %v1522_v3 = vmul.f32 %v3246_v51, %v3246_v51  ;;  %v3276_v51 = vpop.f32.mrf.mxu1 }
 0x1c3   :  { %v1456_v59 = vpop.f32.mrf.mxu0  ;;  %v562_v9 = vpop.xlane.xlu1 %561  ;;  %3744 = vst [vmem:[#allocation76_spill] sm:$0xff] %v3276_v51 }
 0x1c4   :  { %v3255_v58 = vadd.f32 %v3120_v21, %v1456_v59  ;;  %1570 = vadd.xlane.f32.xlu1 %v1519_v4  ;;  %1572 = vadd.xlane.f32.xlu0 %v1520_v25  ;;  %3741 = vst [vmem:[#allocation73_spill] sm:$0xff] %v3258_v7  ;;  %v1523_v15 = vmul.f32 %v3258_v7, %v3258_v7  ;;  %v3288_v29 = vpop.f32.mrf.mxu1 }
 0x1c5   :  { %v2312_v36 = vpop.f32.mrf.mxu0  ;;  %v558_v39 = vpop.xlane.xlu0 %557  ;;  %3747 = vst [vmem:[#allocation79_spill] sm:$0xff] %v3288_v29 }
 0x1c6   :  { %3740 = vst [vmem:[#allocation72_spill] sm:$0xff] %v3255_v58  ;;  %v1521_v16 = vmul.f32 %v3255_v58, %v3255_v58  ;;  %v3270_v25 = vadd.f32 %v2312_v36, %v3120_v21  ;;  %v3300_v20 = vpop.f32.mrf.mxu1  ;;  %2410 = vrsqrt.f32 %v558_v39 }
 0x1c7   :  { %v1469_v49 = vpop.f32.mrf.mxu0  ;;  %v564_v38 = vpop.xlane.xlu1 %563  ;;  %3750 = vst [vmem:[#allocation82_spill] sm:$0xff] %v3300_v20  ;;  %2412 = vrsqrt.f32 %v562_v9 }
 0x1c8   :  { %v3267_v0 = vadd.f32 %v3120_v21, %v1469_v49  ;;  %1574 = vadd.xlane.f32.xlu1 %v1521_v16  ;;  %1576 = vadd.xlane.f32.xlu0 %v1522_v3  ;;  %3743 = vst [vmem:[#allocation75_spill] sm:$0xff] %v3270_v25 }
 0x1c9   :  { %v2313_v59 = vpop.f32.mrf.mxu0  ;;  %v560_v4 = vpop.xlane.xlu0 %559 }
 0x1ca   :  { %3742 = vst [vmem:[#allocation74_spill] sm:$0xff] %v3267_v0  ;;  %v1524_v58 = vmul.f32 %v3267_v0, %v3267_v0  ;;  %v3282_v36 = vadd.f32 %v2313_v59, %v3120_v21  ;;  %v1526_v0 = vmul.f32 %v3270_v25, %v3270_v25 }
 0x1cb   :  { %v1472_v52 = vpop.f32.mrf.mxu0 }
 0x1cc   :  { %v3279_v49 = vadd.f32 %v3120_v21, %v1472_v52  ;;  %1578 = vadd.xlane.f32.xlu1 %v1523_v15  ;;  %1580 = vadd.xlane.f32.xlu0 %v1524_v58  ;;  %3746 = vst [vmem:[#allocation78_spill] sm:$0xff] %v3282_v36 }
 0x1cd   :  { %v2316_v3 = vpop.f32.mrf.mxu0  ;;  %v570_v16 = vpop.xlane.xlu0 %569 }
 0x1ce   :  { %3745 = vst [vmem:[#allocation77_spill] sm:$0xff] %v3279_v49  ;;  %v1525_v7 = vmul.f32 %v3279_v49, %v3279_v49  ;;  %v3294_v59 = vadd.f32 %v2316_v3, %v3120_v21  ;;  %v1527_v49 = vmul.f32 %v3282_v36, %v3282_v36 }
 0x1cf   :  { %v572_v51 = vpop.xlane.xlu1 %571  ;;  %v1485_v47 = vpop.f32.mrf.mxu0 }
 0x1d0   :  { %v3291_v52 = vadd.f32 %v3120_v21, %v1485_v47  ;;  %1582 = vadd.xlane.f32.xlu1 %v1525_v7  ;;  %1584 = vadd.xlane.f32.xlu0 %v1526_v0  ;;  %3749 = vst [vmem:[#allocation81_spill] sm:$0xff] %v3294_v59  ;;  %v1530_v36 = vmul.f32 %v3294_v59, %v3294_v59 }
 0x1d1   :  { %v2317_v58 = vpop.f32.mrf.mxu0  ;;  %v566_v15 = vpop.xlane.xlu0 %565 }
 0x1d2   :  { %3748 = vst [vmem:[#allocation80_spill] sm:$0xff] %v3291_v52  ;;  %v1528_v25 = vmul.f32 %v3291_v52, %v3291_v52  ;;  %v3306_v7 = vadd.f32 %v2317_v58, %v3120_v21  ;;  %v3312_v52 = vpop.f32.mrf.mxu1  ;;  %2414 = vrsqrt.f32 %v566_v15 }
 0x1d3   :  { %v1488_v29 = vpop.f32.mrf.mxu0  ;;  %v568_v62 = vpop.xlane.xlu1 %567  ;;  %3753 = vst [vmem:[#allocation85_spill] sm:$0xff] %v3312_v52  ;;  %2416 = vrsqrt.f32 %v560_v4 }
 0x1d4   :  { %v3303_v47 = vadd.f32 %v3120_v21, %v1488_v29  ;;  %1586 = vadd.xlane.f32.xlu1 %v1527_v49  ;;  %1588 = vadd.xlane.f32.xlu0 %v1528_v25  ;;  %3752 = vst [vmem:[#allocation84_spill] sm:$0xff] %v3306_v7  ;;  %v1531_v29 = vmul.f32 %v3306_v7, %v3306_v7  ;;  %v3316_v25 = vpop.f32.mrf.mxu1  ;;  %2418 = vrsqrt.f32 %v564_v38 }
 0x1d5   :  { %v578_v0 = vpop.xlane.xlu0 %577  ;;  %3754 = vst [vmem:[#allocation86_spill] sm:$0xff] %v3316_v25  ;;  %2420 = vrsqrt.f32 %v568_v62 }
 0x1d6   :  { %3751 = vst [vmem:[#allocation83_spill] sm:$0xff] %v3303_v47  ;;  %v1529_v3 = vmul.f32 %v3303_v47, %v3303_v47  ;;  %v3318_v58 = vpop.f32.mrf.mxu1  ;;  %2422 = vrsqrt.f32 %v570_v16 }
 0x1d7   :  { %v580_v20 = vpop.xlane.xlu1 %579  ;;  %3755 = vst [vmem:[#allocation87_spill] sm:$0xff] %v3318_v58 }
 0x1d8   :  { %1590 = vadd.xlane.f32.xlu1 %v1529_v3  ;;  %1592 = vadd.xlane.f32.xlu0 %v1530_v36  ;;  %v3320_v36 = vpop.f32.mrf.mxu1 }
 0x1d9   :  { %v574_v33 = vpop.xlane.xlu0 %573  ;;  %3756 = vst [vmem:[#allocation88_spill] sm:$0xff] %v3320_v36 }
 0x1da   :  { %2424 = vrsqrt.f32 %v574_v33  ;;  %v3322_v25 = vpop.f32.mrf.mxu1  ;;  %v3331_v33 = vld [vmem:[%s3626_s9] ss:$0 sm:$0xff] }
 0x1db   :  { %v576_v49 = vpop.xlane.xlu1 %575  ;;  %3757 = vst [vmem:[#allocation89_spill] sm:$0xff] %v3322_v25  ;;  %2426 = vrsqrt.f32 %v572_v51  ;;  %v935_v58 = vadd.f32 %v3010_v6, %v3331_v33 }
 0x1dc   :  { %1594 = vadd.xlane.f32.xlu1 %v1531_v29  ;;  %2428 = vrsqrt.f32 %v576_v49  ;;  %v2411_v29 = vpop.eup %2410  ;;  %v3326_v15 = vpop.f32.mrf.mxu1  ;;  %v927_v49 = vadd.f32 %v3331_v33, %v3022_v18  ;;  %v930_v18 = vadd.f32 %v3331_v33, %v3046_v46 }
 0x1dd   :  { %v586_v21 = vpop.xlane.xlu0 %585  ;;  %2430 = vrsqrt.f32 %v578_v0  ;;  %3758 = vst [vmem:[#allocation90_spill] sm:$0xff] %v3326_v15  ;;  %v2413_v38 = vpop.eup %2412  ;;  %v701_v51 = vmul.f32 %v2411_v29, %v2863_v28  ;;  %v943_v28 = vadd.f32 %v3331_v33, %v3070_v19 }
 0x1de   :  { %v3338_v15 = vpop.f32.mrf.mxu1  ;;  %v703_v25 = vmul.f32 %v2413_v38, %v2860_v26 }
 0x1df   :  { %v588_v59 = vpop.xlane.xlu1 %587  ;;  %v2415_v4 = vpop.eup %2414  ;;  %3759 = vst [vmem:[#allocation91_spill] sm:$0xff] %v3338_v15  ;;  %v1117_v15 = vmul.f32 %v927_v49, %v701_v51  ;;  %v946_v51 = vadd.f32 %v3331_v33, %v3094_v11 }
 0x1e0   :  { %v2417_v16 = vpop.eup %2416  ;;  %v705_v52 = vmul.f32 %v2415_v4, %v2883_v41  ;;  %v938_v41 = vadd.f32 %v3034_v32, %v3331_v33  ;;  %v3355_v4 = vpop.f32.mrf.mxu1  ;;  %v1119_v14 = vmul.f32 %v935_v58, %v703_v25 }
 0x1e1   :  { %v582_v47 = vpop.xlane.xlu0 %581  ;;  %v2419_v0 = vpop.eup %2418 }
 0x1e2   :  { %2432 = vrsqrt.f32 %v582_v47  ;;  %v2421_v47 = vpop.eup %2420  ;;  %v704_v6 = vmul.f32 %v2419_v0, %v2868_v31  ;;  %v1167_v49 = vadd.f32 %v1119_v14, %v1117_v15  ;;  %v3365_v0 = vpop.f32.mrf.mxu1 }
 0x1e3   :  { %v584_v3 = vpop.xlane.xlu1 %583  ;;  %2434 = vrsqrt.f32 %v580_v20  ;;  %v702_v20 = vmul.f32 %v2417_v16, %v2873_v34  ;;  %v706_v19 = vmul.f32 %v2421_v47, %v2891_v45  ;;  %v1121_v34 = vmul.f32 %v943_v28, %v705_v52 }
 0x1e4   :  { %2436 = vrsqrt.f32 %v584_v3  ;;  %v2423_v3 = vpop.eup %2422  ;;  %v959_v52 = vadd.f32 %v3331_v33, %v3115_v22  ;;  %v1120_v25 = vmul.f32 %v938_v41, %v704_v6 }
 0x1e5   :  { %v594_v7 = vpop.xlane.xlu0 %593  ;;  %2438 = vrsqrt.f32 %v586_v21  ;;  %v1118_v21 = vmul.f32 %v930_v18, %v702_v20  ;;  %v707_v32 = vmul.f32 %v2423_v3, %v2878_v37  ;;  %v1122_v58 = vmul.f32 %v946_v51, %v706_v19 }
 0x1e6   :  { %v1168_v47 = vadd.f32 %v1167_v49, %v1121_v34  ;;  %v967_v3 = vadd.f32 %v3106_v55, %v3331_v33 }
 0x1e7   :  { %v3324_v39 = vpop.xlane.xlu1 %595  ;;  %v2425_v38 = vpop.eup %2424  ;;  %v1190_v14 = vadd.f32 %v1120_v25, %v1118_v21 }
 0x1e8   :  { %v2427_v46 = vpop.eup %2426  ;;  %v709_v45 = vmul.f32 %v2425_v38, %v2903_v53  ;;  %v954_v53 = vadd.f32 %v3082_v44, %v3331_v33 }
 0x1e9   :  { %v590_v9 = vpop.xlane.xlu0 %589  ;;  %v2429_v31 = vpop.eup %2428  ;;  %v708_v37 = vmul.f32 %v2427_v46, %v2886_v42  ;;  %v1191_v18 = vadd.f32 %v1190_v14, %v1122_v58  ;;  %v991_v58 = vadd.f32 %v3331_v33, %v3216_v56 }
 0x1ea   :  { %2440 = vrsqrt.f32 %v590_v9  ;;  %v951_v9 = vadd.f32 %v3058_v63, %v3331_v33  ;;  %v2431_v63 = vpop.eup %2430  ;;  %v710_v22 = vmul.f32 %v2429_v31, %v2911_v57  ;;  %v1125_v28 = vmul.f32 %v959_v52, %v709_v45  ;;  %v3378_v42 = vpop.f32.mrf.mxu1 }
 0x1eb   :  { %v592_v62 = vpop.xlane.xlu1 %591  ;;  %2442 = vrsqrt.f32 %v588_v59  ;;  %v711_v44 = vmul.f32 %v2431_v63, %v2896_v48  ;;  %v1124_v19 = vmul.f32 %v954_v53, %v708_v37  ;;  %v970_v48 = vadd.f32 %v3132_v30, %v3331_v33 }
 0x1ec   :  { %2444 = vrsqrt.f32 %v592_v62  ;;  %v1123_v15 = vmul.f32 %v951_v9, %v707_v32  ;;  %v3389_v51 = vpop.f32.mrf.mxu1  ;;  %v983_v45 = vadd.f32 %v3156_v61, %v3331_v33 }
 0x1ed   :  { %v3336_v36 = vpop.xlane.xlu0 %601  ;;  %2446 = vrsqrt.f32 %v594_v7  ;;  %v1192_v9 = vadd.f32 %v1191_v18, %v1124_v19  ;;  %v994_v18 = vadd.f32 %v3331_v33, %v3240_v23  ;;  %v1002_v23 = vadd.f32 %v3228_v40, %v3331_v33  ;;  %v3760_v19 = vld [vmem:[#allocation21_spill] sm:$0xff] }
 0x1ee   :  { %v1169_v57 = vadd.f32 %v1168_v47, %v1123_v15 }
 0x1ef   :  { %v3346_v29 = vpop.xlane.xlu1 %603  ;;  %v2433_v62 = vpop.eup %2432 }
 0x1f0   :  { %v2435_v20 = vpop.eup %2434  ;;  %v713_v6 = vmul.f32 %v2433_v62, %v2923_v1  ;;  %v1170_v46 = vadd.f32 %v1169_v57, %v1125_v28  ;;  %v3400_v62 = vpop.f32.mrf.mxu1 }
 0x1f1   :  { %v598_v26 = vpop.xlane.xlu0 %597  ;;  %v2437_v38 = vpop.eup %2436  ;;  %v712_v21 = vmul.f32 %v2435_v20, %v2906_v54  ;;  %v978_v54 = vadd.f32 %v3331_v33, %v3192_v50  ;;  %v999_v20 = vadd.f32 %v3204_v24, %v3331_v33 }
 0x1f2   :  { %2448 = vrsqrt.f32 %v598_v26  ;;  %v962_v26 = vadd.f32 %v3331_v33, %v3144_v35  ;;  %v2439_v55 = vpop.eup %2438  ;;  %v714_v1 = vmul.f32 %v2437_v38, %v2931_v5 }
 0x1f3   :  { %v600_v16 = vpop.xlane.xlu1 %599  ;;  %2450 = vrsqrt.f32 %v3324_v39  ;;  %v975_v39 = vadd.f32 %v3331_v33, %v3168_v12  ;;  %v1127_v12 = vmul.f32 %v967_v3, %v711_v44  ;;  %v715_v52 = vmul.f32 %v2439_v55, %v2916_v60  ;;  %v3761_v55 = vld [vmem:[#allocation24_spill] sm:$0xff] }
 0x1f4   :  { %2452 = vrsqrt.f32 %v600_v16  ;;  %v1126_v34 = vmul.f32 %v962_v26, %v710_v22  ;;  %v1128_v63 = vmul.f32 %v970_v48, %v712_v21  ;;  %v1130_v47 = vmul.f32 %v978_v54, %v714_v1  ;;  %v3762_v1 = vld [vmem:[#allocation71_spill] sm:$0xff]  ;;  %v3765_v54 = vld [vmem:[#allocation26_spill] sm:$0xff] }
 0x1f5   :  { %v610_v59 = vpop.xlane.xlu0 %609  ;;  %2454 = vrsqrt.f32 %v3336_v36  ;;  %v1129_v31 = vmul.f32 %v975_v39, %v713_v6  ;;  %v1171_v5 = vadd.f32 %v1170_v46, %v1127_v12  ;;  %v986_v60 = vadd.f32 %v3180_v43, %v3331_v33 }
 0x1f6   :  { %v1193_v32 = vadd.f32 %v1192_v9, %v1126_v34  ;;  %v1131_v56 = vmul.f32 %v983_v45, %v715_v52  ;;  %v1015_v40 = vadd.f32 %v3762_v1, %v3331_v33  ;;  %v3766_v52 = vld [vmem:[#allocation85_spill] sm:$0xff]  ;;  %v3777_v1 = vld [vmem:[#allocation32_spill] sm:$0xff] }
 0x1f7   :  { %v3367_v11 = vpop.xlane.xlu1 %611  ;;  %v2441_v16 = vpop.eup %2440  ;;  %v1172_v14 = vadd.f32 %v1171_v5, %v1129_v31  ;;  %v1023_v5 = vadd.f32 %v3331_v33, %v3766_v52 }
 0x1f8   :  { %v2443_v49 = vpop.eup %2442  ;;  %v717_v25 = vmul.f32 %v2441_v16, %v2943_v13  ;;  %v1194_v13 = vadd.f32 %v1193_v32, %v1128_v63 }
 0x1f9   :  { %v606_v7 = vpop.xlane.xlu0 %605  ;;  %v2445_v30 = vpop.eup %2444  ;;  %v716_v53 = vmul.f32 %v2443_v49, %v2926_v2  ;;  %v3764_v49 = vld [vmem:[#allocation22_spill] sm:$0xff] }
 0x1fa   :  { %2456 = vrsqrt.f32 %v606_v7  ;;  %v2447_v61 = vpop.eup %2446  ;;  %v718_v22 = vmul.f32 %v2445_v30, %v2951_v17  ;;  %v1133_v15 = vmul.f32 %v991_v58, %v717_v25  ;;  %v1195_v7 = vadd.f32 %v1194_v13, %v1130_v47  ;;  %v3411_v2 = vpop.f32.mrf.mxu1 }
 0x1fb   :  { %v608_v41 = vpop.xlane.xlu1 %607  ;;  %2458 = vrsqrt.f32 %v3346_v29  ;;  %v719_v3 = vmul.f32 %v2447_v61, %v2936_v8  ;;  %v1173_v17 = vadd.f32 %v1172_v14, %v1131_v56  ;;  %v1132_v44 = vmul.f32 %v986_v60, %v716_v53  ;;  %v3768_v53 = vld [vmem:[#allocation76_spill] sm:$0xff] }
 0x1fc   :  { %2460 = vrsqrt.f32 %v608_v41  ;;  %v1134_v57 = vmul.f32 %v994_v18, %v718_v22  ;;  %v1018_v60 = vadd.f32 %v3768_v53, %v3331_v33  ;;  %v3769_v22 = vld [vmem:[#allocation28_spill] sm:$0xff] }
 0x1fd   :  { %v618_v35 = vpop.xlane.xlu0 %617  ;;  %2462 = vrsqrt.f32 %v610_v59  ;;  %v1174_v24 = vadd.f32 %v1173_v17, %v1133_v15  ;;  %v1196_v8 = vadd.f32 %v1195_v7, %v1132_v44  ;;  %v3772_v44 = vld [vmem:[#allocation25_spill] sm:$0xff] }
 0x1ff   :  { %v620_v36 = vpop.xlane.xlu1 %619  ;;  %v2449_v37 = vpop.eup %2448  ;;  %v1197_v9 = vadd.f32 %v1196_v8, %v1134_v57 }
 0x200   :  { %v2451_v28 = vpop.eup %2450  ;;  %v721_v26 = vmul.f32 %v2449_v37, %v2963_v27  ;;  %v3421_v27 = vpop.f32.mrf.mxu1 }
 0x201   :  { %v614_v29 = vpop.xlane.xlu0 %613  ;;  %v2453_v43 = vpop.eup %2452  ;;  %v720_v34 = vmul.f32 %v2451_v28, %v3760_v19 }
 0x202   :  { %2464 = vrsqrt.f32 %v614_v29  ;;  %v2455_v6 = vpop.eup %2454  ;;  %v722_v46 = vmul.f32 %v2453_v43, %v3761_v55  ;;  %v3431_v29 = vpop.f32.mrf.mxu1  ;;  %v3770_v43 = vld [vmem:[#allocation82_spill] sm:$0xff] }
 0x203   :  { %v616_v50 = vpop.xlane.xlu1 %615  ;;  %2466 = vrsqrt.f32 %v3367_v11  ;;  %v1007_v11 = vadd.f32 %v3331_v33, %v3264_v10  ;;  %v1135_v10 = vmul.f32 %v999_v20, %v719_v3  ;;  %v723_v32 = vmul.f32 %v2455_v6, %v3764_v49 }
 0x204   :  { %2468 = vrsqrt.f32 %v616_v50  ;;  %v1136_v25 = vmul.f32 %v1002_v23, %v720_v34  ;;  %v3767_v50 = vld [vmem:[#allocation23_spill] sm:$0xff]  ;;  %v1031_v3 = vadd.f32 %v3770_v43, %v3331_v33 }
 0x205   :  { %v626_v59 = vpop.xlane.xlu0 %625  ;;  %2470 = vrsqrt.f32 %v618_v35  ;;  %v1137_v16 = vmul.f32 %v1007_v11, %v721_v26  ;;  %v3763_v35 = vld [vmem:[#allocation79_spill] sm:$0xff]  ;;  %v1175_v45 = vadd.f32 %v1174_v24, %v1135_v10  ;;  %v1139_v15 = vmul.f32 %v1015_v40, %v723_v32  ;;  %v3441_v26 = vpop.f32.mrf.mxu1  ;;  %v3773_v24 = vld [vmem:[#allocation30_spill] sm:$0xff] }
 0x206   :  { %v1010_v12 = vadd.f32 %v3331_v33, %v3763_v35  ;;  %v1198_v13 = vadd.f32 %v1197_v9, %v1136_v25  ;;  %v3775_v10 = vld [vmem:[#allocation27_spill] sm:$0xff] }
 0x207   :  { %v628_v38 = vpop.xlane.xlu1 %627  ;;  %v2457_v41 = vpop.eup %2456  ;;  %v1176_v47 = vadd.f32 %v1175_v45, %v1137_v16 }
 0x208   :  { %v2459_v48 = vpop.eup %2458  ;;  %v725_v30 = vmul.f32 %v2457_v41, %v3765_v54  ;;  %v1138_v58 = vmul.f32 %v1010_v12, %v722_v46  ;;  %v3451_v35 = vpop.f32.mrf.mxu1 }
 0x209   :  { %v622_v39 = vpop.xlane.xlu0 %621  ;;  %v2461_v31 = vpop.eup %2460  ;;  %v724_v37 = vmul.f32 %v2459_v48, %v3767_v50  ;;  %v1177_v6 = vadd.f32 %v1176_v47, %v1139_v15  ;;  %v3782_v15 = vld [vmem:[#allocation90_spill] sm:$0xff] }
 0x20a   :  { %2472 = vrsqrt.f32 %v622_v39  ;;  %v2463_v63 = vpop.eup %2462  ;;  %v726_v56 = vmul.f32 %v2461_v31, %v3769_v22  ;;  %v1141_v28 = vmul.f32 %v1023_v5, %v725_v30  ;;  %v1199_v18 = vadd.f32 %v1198_v13, %v1138_v58  ;;  %v3774_v39 = vld [vmem:[#allocation89_spill] sm:$0xff]  ;;  %v3778_v30 = vld [vmem:[#allocation88_spill] sm:$0xff]  ;;  %v3779_v5 = vld [vmem:[#allocation91_spill] sm:$0xff]  ;;  %v3461_v22 = vpop.f32.mrf.mxu1 }
 0x20b   :  { %2474 = vrsqrt.f32 %v620_v36  ;;  %v624_v21 = vpop.xlane.xlu1 %623  ;;  %v727_v57 = vmul.f32 %v2463_v63, %v3772_v44  ;;  %v1140_v19 = vmul.f32 %v1018_v60, %v724_v37  ;;  %v1047_v52 = vadd.f32 %v3778_v30, %v3331_v33  ;;  %v3780_v58 = vld [vmem:[#allocation29_spill] sm:$0xff] }
 0x20c   :  { %2476 = vrsqrt.f32 %v624_v21  ;;  %v1178_v8 = vadd.f32 %v1177_v6, %v1141_v28  ;;  %v3776_v21 = vld [vmem:[#allocation86_spill] sm:$0xff]  ;;  %v1055_v37 = vadd.f32 %v3331_v33, %v3365_v0  ;;  %v1050_v28 = vadd.f32 %v3782_v15, %v3331_v33 }
 0x20d   :  { %v634_v36 = vpop.xlane.xlu0 %633  ;;  %2478 = vrsqrt.f32 %v626_v59  ;;  %v3771_v59 = vld [vmem:[#allocation87_spill] sm:$0xff]  ;;  %v1034_v48 = vadd.f32 %v3776_v21, %v3331_v33  ;;  %v1200_v9 = vadd.f32 %v1199_v18, %v1140_v19  ;;  %v1143_v31 = vmul.f32 %v1031_v3, %v727_v57  ;;  %v3784_v3 = vld [vmem:[#allocation36_spill] sm:$0xff] }
 0x20e   :  { %2480 = vrsqrt.f32 %v628_v38  ;;  %v1026_v17 = vadd.f32 %v3331_v33, %v3771_v59  ;;  %v1039_v38 = vadd.f32 %v3331_v33, %v3774_v39  ;;  %v1058_v6 = vadd.f32 %v3331_v33, %v3389_v51  ;;  %v3785_v39 = vld [vmem:[#allocation33_spill] sm:$0xff] }
 0x20f   :  { %v636_v61 = vpop.xlane.xlu1 %635  ;;  %v2465_v14 = vpop.eup %2464  ;;  %v1179_v47 = vadd.f32 %v1178_v8, %v1143_v31  ;;  %v1066_v51 = vadd.f32 %v3378_v42, %v3331_v33  ;;  %v3788_v31 = vld [vmem:[#allocation40_spill] sm:$0xff]  ;;  %v3789_v42 = vld [vmem:[#allocation37_spill] sm:$0xff] }
 0x210   :  { %v2467_v20 = vpop.eup %2466  ;;  %v729_v23 = vmul.f32 %v2465_v14, %v3773_v24  ;;  %v1142_v34 = vmul.f32 %v1026_v17, %v726_v56  ;;  %v3781_v14 = vld [vmem:[#allocation34_spill] sm:$0xff]  ;;  %v1089_v24 = vpop.f32.mrf.mxu1 }
 0x211   :  { %v630_v7 = vpop.xlane.xlu0 %629  ;;  %v2469_v11 = vpop.eup %2468  ;;  %v728_v16 = vmul.f32 %v2467_v20, %v3775_v10  ;;  %v3783_v20 = vld [vmem:[#allocation31_spill] sm:$0xff]  ;;  %v3786_v10 = vld [vmem:[#allocation38_spill] sm:$0xff] }
 0x212   :  { %2482 = vrsqrt.f32 %v630_v7  ;;  %v2471_v46 = vpop.eup %2470  ;;  %v730_v40 = vmul.f32 %v2469_v11, %v3777_v1  ;;  %v1145_v49 = vmul.f32 %v1039_v38, %v729_v23  ;;  %v1201_v54 = vadd.f32 %v1200_v9, %v1142_v34 }
 0x213   :  { %v632_v41 = vpop.xlane.xlu1 %631  ;;  %v731_v63 = vmul.f32 %v2471_v46, %v3780_v58  ;;  %v1144_v60 = vmul.f32 %v1034_v48, %v728_v16  ;;  %v1071_v34 = vadd.f32 %v3331_v33, %v3411_v2  ;;  %v2268_v2 = vpop.f32.mrf.mxu1 }
 0x214   :  { %2484 = vrsqrt.f32 %v632_v41  ;;  %v1180_v56 = vadd.f32 %v1179_v47, %v1145_v49  ;;  %v1063_v41 = vadd.f32 %v3355_v4, %v3331_v33 }
 0x215   :  { %2486 = vrsqrt.f32 %v634_v36  ;;  %v642_v55 = vpop.xlane.xlu0 %641  ;;  %v1042_v36 = vadd.f32 %v3331_v33, %v3779_v5  ;;  %v1202_v43 = vadd.f32 %v1201_v54, %v1144_v60  ;;  %v1147_v0 = vmul.f32 %v1047_v52, %v731_v63 }
 0x216   :  { %2488 = vrsqrt.f32 %v636_v61  ;;  %v1074_v52 = vadd.f32 %v3331_v33, %v3431_v29  ;;  %v1082_v29 = vadd.f32 %v3421_v27, %v3331_v33 }
 0x217   :  { %v2473_v12 = vpop.eup %2472  ;;  %v644_v32 = vpop.xlane.xlu1 %643  ;;  %v1146_v13 = vmul.f32 %v1042_v36, %v730_v40  ;;  %v1181_v19 = vadd.f32 %v1180_v56, %v1147_v0  ;;  %v3787_v40 = vld [vmem:[#allocation35_spill] sm:$0xff] }
 0x218   :  { %v2475_v45 = vpop.eup %2474  ;;  %v733_v50 = vmul.f32 %v2473_v12, %v3781_v14  ;;  %v3790_v56 = vld [vmem:[#allocation39_spill] sm:$0xff] }
 0x219   :  { %v2477_v25 = vpop.eup %2476  ;;  %v638_v53 = vpop.xlane.xlu0 %637  ;;  %v732_v18 = vmul.f32 %v2475_v45, %v3783_v20  ;;  %v1203_v57 = vadd.f32 %v1202_v43, %v1146_v13 }
 0x21a   :  { %2490 = vrsqrt.f32 %v638_v53  ;;  %v2479_v7 = vpop.eup %2478  ;;  %v734_v59 = vmul.f32 %v2477_v25, %v3784_v3  ;;  %v1149_v17 = vmul.f32 %v1055_v37, %v733_v50  ;;  %v1079_v25 = vadd.f32 %v3400_v62, %v3331_v33  ;;  %v1102_v37 = vpop.f32.mrf.mxu1 }
 0x21b   :  { %2492 = vrsqrt.f32 %v642_v55  ;;  %v640_v61 = vpop.xlane.xlu1 %639  ;;  %v2481_v44 = vpop.eup %2480  ;;  %v735_v38 = vmul.f32 %v2479_v7, %v3785_v39  ;;  %v1148_v55 = vmul.f32 %v1050_v28, %v732_v18  ;;  %v1087_v50 = vadd.f32 %v3331_v33, %v3451_v35 }
 0x21c   :  { %2494 = vrsqrt.f32 %v640_v61  ;;  %v1150_v46 = vmul.f32 %v1058_v6, %v734_v59  ;;  %v1182_v48 = vadd.f32 %v1181_v19, %v1149_v17  ;;  %v736_v4 = vmul.f32 %v2481_v44, %v3787_v40  ;;  %v3791_v61 = vld [vmem:[#allocation42_spill] sm:$0xff]  ;;  %v3792_v17 = vld [vmem:[#allocation44_spill] sm:$0xff]  ;;  %v2269_v27 = vpop.f32.mrf.mxu1  ;;  %v3793_v44 = vld [vmem:[#allocation41_spill] sm:$0xff] }
 0x21d   :  { %2496 = vrsqrt.f32 %v644_v32  ;;  %v650_v11 = vpop.xlane.xlu0 %649  ;;  %v1204_v12 = vadd.f32 %v1203_v57, %v1148_v55  ;;  %v1151_v32 = vmul.f32 %v1063_v41, %v735_v38  ;;  %v1090_v18 = vadd.f32 %v3331_v33, %v1089_v24  ;;  %v3794_v19 = vld [vmem:[#allocation43_spill] sm:$0xff]  ;;  %v3795_v40 = vld [vmem:[#allocation45_spill] sm:$0xff] }
 0x21e   :  { %2498 = vrsqrt.f32 %v650_v11  ;;  %v1152_v47 = vmul.f32 %v1066_v51, %v736_v4  ;;  %v1095_v6 = vadd.f32 %v3441_v26, %v3331_v33 }
 0x21f   :  { %v2483_v23 = vpop.eup %2482  ;;  %v652_v8 = vpop.xlane.xlu1 %651  ;;  %v1205_v30 = vadd.f32 %v1204_v12, %v1150_v46  ;;  %v1183_v58 = vadd.f32 %v1182_v48, %v1151_v32  ;;  %v3796_v12 = vld [vmem:[#allocation46_spill] sm:$0xff] }
 0x220   :  { %v737_v16 = vmul.f32 %v2483_v23, %v3786_v10  ;;  %2500 = vrsqrt.f32 %v652_v8  ;;  %v1098_v8 = vadd.f32 %v3461_v22, %v3331_v33  ;;  %v1105_v48 = vpop.f32.mrf.mxu1 }
 0x221   :  { %v2485_v21 = vpop.eup %2484  ;;  %v646_v9 = vpop.xlane.xlu0 %645  ;;  %v1206_v28 = vadd.f32 %v1205_v30, %v1152_v47 }
 0x222   :  { %v2487_v1 = vpop.eup %2486  ;;  %v738_v49 = vmul.f32 %v2485_v21, %v3788_v31  ;;  %2502 = vrsqrt.f32 %v646_v9  ;;  %v1153_v45 = vmul.f32 %v1071_v34, %v737_v16  ;;  %v1103_v21 = vadd.f32 %v3331_v33, %v1102_v37 }
 0x223   :  { %v648_v54 = vpop.xlane.xlu1 %647  ;;  %v2489_v5 = vpop.eup %2488  ;;  %v739_v36 = vmul.f32 %v2487_v1, %v3789_v42  ;;  %v1111_v9 = vadd.f32 %v2268_v2, %v3331_v33  ;;  %v3797_v42 = vld [vmem:[#allocation47_spill] sm:$0xff]  ;;  %v3798_v2 = vld [vmem:[#allocation48_spill] sm:$0xff] }
 0x224   :  { %2504 = vrsqrt.f32 %v648_v54  ;;  %v1154_v14 = vmul.f32 %v1074_v52, %v738_v49  ;;  %v1184_v60 = vadd.f32 %v1183_v58, %v1153_v45  ;;  %v740_v15 = vmul.f32 %v2489_v5, %v3790_v56 }
 0x225   :  { %v1533_v63 = vpop.xlane.xlu0 %1532  ;;  %v1155_v20 = vmul.f32 %v1079_v25, %v739_v36  ;;  %v1114_v45 = vadd.f32 %v2269_v27, %v3331_v33  ;;  %v1106_v54 = vadd.f32 %v3331_v33, %v1105_v48  ;;  %v3802_v27 = vld [vmem:[#allocation52_spill] sm:$0xff]  ;;  %v3805_v48 = vld [vmem:[#allocation54_spill] sm:$0xff] }
 0x226   :  { %2506 = vrsqrt.f32 %v1533_v63  ;;  %v1207_v59 = vadd.f32 %v1206_v28, %v1154_v14  ;;  %v1156_v39 = vmul.f32 %v1082_v29, %v740_v15  ;;  %v3799_v28 = vld [vmem:[#allocation49_spill] sm:$0xff] }
 0x227   :  { %v2491_v53 = vpop.eup %2490  ;;  %v1185_v23 = vadd.f32 %v1184_v60, %v1155_v20 }
 0x228   :  { %v2493_v13 = vpop.eup %2492  ;;  %v741_v7 = vmul.f32 %v2491_v53, %v3791_v61  ;;  %v1208_v16 = vadd.f32 %v1207_v59, %v1156_v39 }
 0x229   :  { %v2495_v62 = vpop.eup %2494  ;;  %v1535_v43 = vpop.xlane.xlu1 %1534  ;;  %v743_v57 = vmul.f32 %v2493_v13, %v3793_v44 }
 0x22a   :  { %v1537_v3 = vpop.xlane.xlu0 %1536  ;;  %v2497_v35 = vpop.eup %2496  ;;  %v1157_v0 = vmul.f32 %v1087_v50, %v741_v7  ;;  %v742_v11 = vmul.f32 %v2495_v62, %v3792_v17  ;;  %2508 = vrsqrt.f32 %v1535_v43  ;;  %v3800_v7 = vld [vmem:[#allocation51_spill] sm:$0xff] }
 0x22b   :  { %2510 = vrsqrt.f32 %v1537_v3  ;;  %v2499_v41 = vpop.eup %2498  ;;  %v744_v34 = vmul.f32 %v2497_v35, %v3794_v19  ;;  %v1159_v26 = vmul.f32 %v1095_v6, %v743_v57  ;;  %v3801_v35 = vld [vmem:[#allocation50_spill] sm:$0xff] }
 0x22c   :  { %v1158_v38 = vmul.f32 %v1090_v18, %v742_v11  ;;  %v1186_v24 = vadd.f32 %v1185_v23, %v1157_v0  ;;  %v747_v4 = vmul.f32 %v2499_v41, %v3795_v40  ;;  %v3803_v23 = vld [vmem:[#allocation53_spill] sm:$0xff]  ;;  %v3806_v40 = vld [vmem:[#allocation56_spill] sm:$0xff] }
 0x22d   :  { %v1539_v55 = vpop.xlane.xlu1 %1538  ;;  %v2501_v10 = vpop.eup %2500  ;;  %v1160_v22 = vmul.f32 %v1098_v8, %v744_v34  ;;  %v3804_v34 = vld [vmem:[#allocation55_spill] sm:$0xff] }
 0x22e   :  { %v1541_v46 = vpop.xlane.xlu0 %1540  ;;  %2512 = vrsqrt.f32 %v1539_v55  ;;  %v1209_v1 = vadd.f32 %v1208_v16, %v1158_v38  ;;  %v1187_v32 = vadd.f32 %v1186_v24, %v1159_v26  ;;  %v748_v36 = vmul.f32 %v2501_v10, %v3797_v42 }
 0x22f   :  { %v2503_v51 = vpop.eup %2502  ;;  %2514 = vrsqrt.f32 %v1541_v46  ;;  %v1163_v58 = vmul.f32 %v1111_v9, %v747_v4 }
 0x230   :  { %v745_v31 = vmul.f32 %v2503_v51, %v3796_v12  ;;  %v1210_v14 = vadd.f32 %v1209_v1, %v1160_v22  ;;  %v1164_v29 = vmul.f32 %v1114_v45, %v748_v36 }
 0x231   :  { %v2505_v49 = vpop.eup %2504  ;;  %v1543_v30 = vpop.xlane.xlu1 %1542 }
 0x232   :  { %v1545_v52 = vpop.xlane.xlu0 %1544  ;;  %v1161_v5 = vmul.f32 %v1103_v21, %v745_v31  ;;  %v746_v25 = vmul.f32 %v2505_v49, %v3798_v2  ;;  %2516 = vrsqrt.f32 %v1543_v30 }
 0x233   :  { %2518 = vrsqrt.f32 %v1545_v52  ;;  %v2507_v50 = vpop.eup %2506 }
 0x234   :  { %v1188_v63 = vadd.f32 %v1187_v32, %v1161_v5  ;;  %v1162_v47 = vmul.f32 %v1106_v54, %v746_v25  ;;  %v1628_v61 = vmul.f32 %v2507_v50, %v3799_v28  ;;  %v3807_v32 = vld [vmem:[#allocation57_spill] sm:$0xff]  ;;  %v3808_v5 = vld [vmem:[#allocation59_spill] sm:$0xff] }
 0x235   :  { %v1547_v37 = vpop.xlane.xlu1 %1546 }
 0x236   :  { %v1549_v53 = vpop.xlane.xlu0 %1548  ;;  %v3506_v60 = vadd.f32 %v1188_v63, %v1163_v58  ;;  %v1211_v33 = vadd.f32 %v1210_v14, %v1162_v47  ;;  %2520 = vrsqrt.f32 %v1547_v37  ;;  %v3809_v63 = vld [vmem:[#allocation58_spill] sm:$0xff] }
 0x237   :  { %v2509_v13 = vpop.eup %2508  ;;  %2522 = vrsqrt.f32 %v1549_v53  ;;  %v3810_v53 = vld [vmem:[#allocation60_spill] sm:$0xff] }
 0x238   :  { %v2511_v56 = vpop.eup %2510  ;;  %v3508_v15 = vadd.f32 %v1211_v33, %v1164_v29  ;;  %v1629_v62 = vmul.f32 %v2509_v13, %v3800_v7  ;;  %v1662_v43 = vmul.f32 %v1628_v61, %v3506_v60  ;;  %v3811_v61 = vld [vmem:[#allocation61_spill] sm:$0xff] }
 0x239   :  { %v1551_v20 = vpop.xlane.xlu1 %1550  ;;  %v1630_v59 = vmul.f32 %v2511_v56, %v3801_v35 }
 0x23a   :  { %v1553_v18 = vpop.xlane.xlu0 %1552  ;;  %2524 = vrsqrt.f32 %v1551_v20  ;;  %v1663_v3 = vmul.f32 %v1629_v62, %v3508_v15 }
 0x23b   :  { %2526 = vrsqrt.f32 %v1553_v18  ;;  %v2513_v0 = vpop.eup %2512  ;;  %v1664_v41 = vmul.f32 %v1630_v59, %v3506_v60 }
 0x23c   :  { %v1694_v17 = vpack.c.bf16 %v1663_v3, %v1662_v43  ;;  %v2515_v11 = vpop.eup %2514  ;;  %v1631_v44 = vmul.f32 %v2513_v0, %v3802_v27  ;;  %v3812_v43 = vld [vmem:[#allocation63_spill] sm:$0xff] }
 0x23d   :  { %v1555_v57 = vpop.xlane.xlu1 %1554  ;;  %v1632_v39 = vmul.f32 %v2515_v11, %v3803_v23  ;;  %v3813_v11 = vld [vmem:[#allocation62_spill] sm:$0xff]  ;;  %v3814_v23 = vld [vmem:[#allocation64_spill] sm:$0xff] }
 0x23e   :  { %v1557_v6 = vpop.xlane.xlu0 %1556  ;;  %2528 = vrsqrt.f32 %v1555_v57  ;;  %2334 = vmatprep.mubr.bf16.mxu1 %v1694_v17  ;;  %v1665_v24 = vmul.f32 %v1631_v44, %v3508_v15 }
 0x23f   :  { %v2517_v38 = vpop.eup %2516  ;;  %2530 = vrsqrt.f32 %v1557_v6  ;;  %v1666_v16 = vmul.f32 %v1632_v39, %v3506_v60 }
 0x240   :  { %v2519_v19 = vpop.eup %2518  ;;  %v1633_v8 = vmul.f32 %v2517_v38, %v3804_v34  ;;  %v1695_v10 = vpack.c.bf16 %v1665_v24, %v1664_v41  ;;  %v3815_v34 = vld [vmem:[#allocation65_spill] sm:$0xff] }
 0x241   :  { %v1559_v55 = vpop.xlane.xlu1 %1558  ;;  %v1634_v51 = vmul.f32 %v2519_v19, %v3805_v48 }
 0x242   :  { %v1561_v46 = vpop.xlane.xlu0 %1560  ;;  %2532 = vrsqrt.f32 %v1559_v55  ;;  %v1667_v21 = vmul.f32 %v1633_v8, %v3508_v15  ;;  %2335 = vmatmul.mubr.bf16.vlgmr.msra.gmra.mxu1 %v1695_v10 }
 0x243   :  { %v2521_v26 = vpop.eup %2520  ;;  %2534 = vrsqrt.f32 %v1561_v46  ;;  %v1668_v49 = vmul.f32 %v1634_v51, %v3506_v60 }
 0x244   :  { %v2523_v9 = vpop.eup %2522  ;;  %v1696_v1 = vpack.c.bf16 %v1667_v21, %v1666_v16  ;;  %v1635_v4 = vmul.f32 %v2521_v26, %v3806_v40  ;;  %v3816_v16 = vld [vmem:[#allocation67_spill] sm:$0xff] }
 0x245   :  { %v1563_v12 = vpop.xlane.xlu1 %1562  ;;  %v1636_v45 = vmul.f32 %v2523_v9, %v3807_v32 }
 0x246   :  { %v1565_v31 = vpop.xlane.xlu0 %1564  ;;  %2536 = vrsqrt.f32 %v1563_v12  ;;  %2338 = vmatprep.mubr.bf16.mxu1 %v1696_v1  ;;  %v1669_v22 = vmul.f32 %v1635_v4, %v3508_v15  ;;  %v3817_v1 = vld [vmem:[#allocation66_spill] sm:$0xff] }
 0x247   :  { %v2525_v54 = vpop.eup %2524  ;;  %2538 = vrsqrt.f32 %v1565_v31  ;;  %v1670_v25 = vmul.f32 %v1636_v45, %v3506_v60 }
 0x248   :  { %v2527_v30 = vpop.eup %2526  ;;  %v1697_v52 = vpack.c.bf16 %v1669_v22, %v1668_v49  ;;  %v1637_v42 = vmul.f32 %v2525_v54, %v3808_v5  ;;  %v3818_v49 = vld [vmem:[#allocation68_spill] sm:$0xff] }
 0x249   :  { %v1567_v36 = vpop.xlane.xlu1 %1566  ;;  %v1638_v47 = vmul.f32 %v2527_v30, %v3809_v63 }
 0x24a   :  { %v1569_v2 = vpop.xlane.xlu0 %1568  ;;  %2540 = vrsqrt.f32 %v1567_v36  ;;  %v1671_v58 = vmul.f32 %v1637_v42, %v3508_v15  ;;  %2339 = vmatmul.mubr.bf16.gmra.mxu1 %v1697_v52  ;;  %v3819_v52 = vld [vmem:[#allocation69_spill] sm:$0xff] }
 0x24b   :  { %v2529_v14 = vpop.eup %2528  ;;  %2542 = vrsqrt.f32 %v1569_v2  ;;  %v1672_v56 = vmul.f32 %v1638_v47, %v3506_v60 }
 0x24c   :  { %v2531_v50 = vpop.eup %2530  ;;  %v1698_v37 = vpack.c.bf16 %v1671_v58, %v1670_v25  ;;  %v1639_v29 = vmul.f32 %v2529_v14, %v3810_v53  ;;  %v3820_v25 = vld [vmem:[#allocation72_spill] sm:$0xff] }
 0x24d   :  { %v1571_v33 = vpop.xlane.xlu1 %1570  ;;  %v1640_v7 = vmul.f32 %v2531_v50, %v3811_v61 }
 0x24e   :  { %v1573_v13 = vpop.xlane.xlu0 %1572  ;;  %2544 = vrsqrt.f32 %v1571_v33  ;;  %2342 = vmatprep.mubr.bf16.mxu1 %v1698_v37  ;;  %v1673_v28 = vmul.f32 %v1639_v29, %v3508_v15  ;;  %v3821_v37 = vld [vmem:[#allocation70_spill] sm:$0xff] }
 0x24f   :  { %v2533_v62 = vpop.eup %2532  ;;  %2546 = vrsqrt.f32 %v1573_v13  ;;  %v1674_v0 = vmul.f32 %v1640_v7, %v3506_v60 }
 0x250   :  { %v2535_v20 = vpop.eup %2534  ;;  %v1699_v18 = vpack.c.bf16 %v1673_v28, %v1672_v56  ;;  %v1641_v3 = vmul.f32 %v2533_v62, %v3812_v43  ;;  %v3822_v56 = vld [vmem:[#allocation73_spill] sm:$0xff] }
 0x251   :  { %v1575_v35 = vpop.xlane.xlu1 %1574  ;;  %v1642_v27 = vmul.f32 %v2535_v20, %v3813_v11  ;;  %v3823_v20 = vld [vmem:[#allocation74_spill] sm:$0xff] }
 0x252   :  { %v1577_v59 = vpop.xlane.xlu0 %1576  ;;  %2548 = vrsqrt.f32 %v1575_v35  ;;  %v1675_v17 = vmul.f32 %v1641_v3, %v3508_v15  ;;  %2343 = vmatmul.mubr.bf16.gmra.mxu1 %v1699_v18 }
 0x253   :  { %v2537_v44 = vpop.eup %2536  ;;  %2550 = vrsqrt.f32 %v1577_v59  ;;  %v1676_v24 = vmul.f32 %v1642_v27, %v3506_v60  ;;  %v3824_v59 = vld [vmem:[#allocation77_spill] sm:$0xff]  ;;  %v3825_v27 = vld [vmem:[#allocation75_spill] sm:$0xff] }
 0x254   :  { %v2539_v57 = vpop.eup %2538  ;;  %v1700_v6 = vpack.c.bf16 %v1675_v17, %v1674_v0  ;;  %v1643_v39 = vmul.f32 %v2537_v44, %v3814_v23 }
 0x255   :  { %v1579_v38 = vpop.xlane.xlu1 %1578  ;;  %v1644_v8 = vmul.f32 %v2539_v57, %v3815_v34 }
 0x256   :  { %v1581_v41 = vpop.xlane.xlu0 %1580  ;;  %2552 = vrsqrt.f32 %v1579_v38  ;;  %2346 = vmatprep.mubr.bf16.mxu1 %v1700_v6  ;;  %v1677_v19 = vmul.f32 %v1643_v39, %v3508_v15  ;;  %v3826_v39 = vld [vmem:[#allocation78_spill] sm:$0xff] }
 0x257   :  { %v2541_v55 = vpop.eup %2540  ;;  %2554 = vrsqrt.f32 %v1581_v41  ;;  %v1678_v26 = vmul.f32 %v1644_v8, %v3506_v60 }
 0x258   :  { %v2543_v46 = vpop.eup %2542  ;;  %v1701_v10 = vpack.c.bf16 %v1677_v19, %v1676_v24  ;;  %v1645_v21 = vmul.f32 %v2541_v55, %v3816_v16  ;;  %v3827_v19 = vld [vmem:[#allocation80_spill] sm:$0xff] }
 0x259   :  { %v1583_v48 = vpop.xlane.xlu1 %1582  ;;  %v1646_v40 = vmul.f32 %v2543_v46, %v3817_v1 }
 0x25a   :  { %v1585_v51 = vpop.xlane.xlu0 %1584  ;;  %2556 = vrsqrt.f32 %v1583_v48  ;;  %v1679_v9 = vmul.f32 %v1645_v21, %v3508_v15  ;;  %2347 = vmatmul.mubr.bf16.gmra.mxu1 %v1701_v10  ;;  %v3828_v10 = vld [vmem:[#allocation83_spill] sm:$0xff] }
 0x25b   :  { %v2545_v4 = vpop.eup %2544  ;;  %2558 = vrsqrt.f32 %v1585_v51  ;;  %v1680_v54 = vmul.f32 %v1646_v40, %v3506_v60  ;;  %v3829_v51 = vld [vmem:[#allocation81_spill] sm:$0xff]  ;;  %v3830_v40 = vld [vmem:[#allocation84_spill] sm:$0xff] }
 0x25c   :  { %v2547_v12 = vpop.eup %2546  ;;  %v1702_v31 = vpack.c.bf16 %v1679_v9, %v1678_v26  ;;  %v1647_v22 = vmul.f32 %v2545_v4, %v3818_v49 }
 0x25d   :  { %v1587_v32 = vpop.xlane.xlu1 %1586  ;;  %v1648_v5 = vmul.f32 %v2547_v12, %v3819_v52 }
 0x25e   :  { %v1589_v45 = vpop.xlane.xlu0 %1588  ;;  %2560 = vrsqrt.f32 %v1587_v32  ;;  %2350 = vmatprep.mubr.bf16.mxu1 %v1702_v31  ;;  %v1681_v30 = vmul.f32 %v1647_v22, %v3508_v15  ;;  %v3577_v22 = vld [vmem:[%s3627_s10] ss:$0 sm:$0xff]  ;;  %s2751_s10 = smov [#allocation15]  }
 0x25f   :  { %v2549_v42 = vpop.eup %2548  ;;  %2562 = vrsqrt.f32 %v1589_v45  ;;  %v1682_v14 = vmul.f32 %v1648_v5, %v3506_v60  ;;  %s1979_s17 = sshll.u32 %s2751_s10, 4  ;;  %s1980_s17 = int_to_ptr.vmem [resolvable:$true] %s1979_s17 }
 0x260   :  { %v2551_v36 = vpop.eup %2550  ;;  %v1703_v2 = vpack.c.bf16 %v1681_v30, %v1680_v54  ;;  %v1649_v58 = vmul.f32 %v2549_v42, %v3820_v25  ;;  %s2710_s3 = scalar_lea.vmem %s1980_s17, 4096  ;;  %p2715_p8 = scmp.lt.s32.totalorder %s1980_s17, %s1980_s17 }
 0x261   :  { %v1591_v63 = vpop.xlane.xlu1 %1590  ;;  %v1650_v53 = vmul.f32 %v2551_v36, %v3821_v37  ;;  %p2711_p7 = scmp.ne.s32.totalorder %s1980_s17, %s2710_s3  ;;  %p2716_p9 = scmp.lt.s32.totalorder %s2710_s3, %s2710_s3 }
 0x262   :  { %v1593_v47 = vpop.xlane.xlu0 %1592  ;;  %2564 = vrsqrt.f32 %v1591_v63  ;;  %v1683_v50 = vmul.f32 %v1649_v58, %v3508_v15  ;;  %2351 = vmatmul.mubr.bf16.gmra.mxu1 %v1703_v2 }
 0x263   :  { %v2553_v29 = vpop.eup %2552  ;;  %2566 = vrsqrt.f32 %v1593_v47  ;;  %v1684_v7 = vmul.f32 %v1650_v53, %v3506_v60  ;;  %p2717_p10 = por %p2716_p9, %p2715_p8 }
 0x264   :  { %v2555_v33 = vpop.eup %2554  ;;  %v1704_v13 = vpack.c.bf16 %v1683_v50, %v1682_v14  ;;  %v1651_v28 = vmul.f32 %v2553_v29, %v3822_v56 }
 0x265   :  { %v1595_v61 = vpop.xlane.xlu1 %1594  ;;  %v1652_v18 = vmul.f32 %v2555_v33, %v3823_v20  ;;  %p2718_p11 = pnand %p2717_p10, %p2711_p7 }
 0x266   :  { %2568 = vrsqrt.f32 %v1595_v61  ;;  %2354 = vmatprep.mubr.bf16.mxu1 %v1704_v13  ;;  %v1685_v62 = vmul.f32 %v1651_v28, %v3508_v15 }
 0x267   :  { %v2557_v43 = vpop.eup %2556  ;;  %v1686_v17 = vmul.f32 %v1652_v18, %v3506_v60 }
 0x268   :  { %v2559_v3 = vpop.eup %2558  ;;  %v1705_v35 = vpack.c.bf16 %v1685_v62, %v1684_v7  ;;  %v1653_v0 = vmul.f32 %v2557_v43, %v3824_v59 }
 0x269   :  { %v1654_v44 = vmul.f32 %v2559_v3, %v3825_v27 }
 0x26a   :  { %v1687_v11 = vmul.f32 %v1653_v0, %v3508_v15  ;;  %2355 = vmatmul.mubr.bf16.gmra.mxu1 %v1705_v35 }
 0x26b   :  { %v2561_v57 = vpop.eup %2560  ;;  %v1688_v41 = vmul.f32 %v1654_v44, %v3506_v60 }
 0x26c   :  { %v2563_v6 = vpop.eup %2562  ;;  %v1706_v23 = vpack.c.bf16 %v1687_v11, %v1686_v17  ;;  %v1655_v38 = vmul.f32 %v2561_v57, %v3826_v39 }
 0x26d   :  { %v1656_v34 = vmul.f32 %v2563_v6, %v3827_v19 }
 0x26e   :  { %2358 = vmatprep.mubr.bf16.mxu1 %v1706_v23  ;;  %v1689_v24 = vmul.f32 %v1655_v38, %v3508_v15 }
 0x26f   :  { %v2565_v8 = vpop.eup %2564  ;;  %v1690_v21 = vmul.f32 %v1656_v34, %v3506_v60 }
 0x270   :  { %v2567_v55 = vpop.eup %2566  ;;  %v1707_v46 = vpack.c.bf16 %v1689_v24, %v1688_v41  ;;  %v1657_v16 = vmul.f32 %v2565_v8, %v3828_v10 }
 0x271   :  { %v1658_v26 = vmul.f32 %v2567_v55, %v3829_v51 }
 0x272   :  { %v1691_v48 = vmul.f32 %v1657_v16, %v3508_v15  ;;  %2359 = vmatmul.mubr.bf16.gmra.mxu1 %v1707_v46 }
 0x273   :  { %v2569_v9 = vpop.eup %2568  ;;  %v1692_v12 = vmul.f32 %v1658_v26, %v3506_v60 }
 0x274   :  { %v1708_v1 = vpack.c.bf16 %v1691_v48, %v1690_v21  ;;  %v1659_v4 = vmul.f32 %v2569_v9, %v3830_v40 }
 0x276   :  { %2362 = vmatprep.mubr.bf16.mxu1 %v1708_v1  ;;  %v1693_v31 = vmul.f32 %v1659_v4, %v3508_v15 }
 0x278   :  { %v1709_v49 = vpack.c.bf16 %v1693_v31, %v1692_v12 }
 0x27a   :  { %2363 = vmatmul.mubr.bf16.gmra.mxu1 %v1709_v49 }
 0x302   :  { %v2336_v32 = vpop.f32.mrf.mxu1 }
 0x303   :  { %v1824_v45 = vadd.f32 %v2336_v32, %v3577_v22 }
 0x304   :  { %v1815_v54 = vpop.f32.mrf.mxu1 }
 0x305   :  { %1944 = vst [vmem:[#allocation15 + $0x10] sm:$0xff] %v1824_v45  ;;  %v1816_v30 = vadd.f32 %v3577_v22, %v1815_v54 }
 0x306   :  { %v2337_v52 = vpop.f32.mrf.mxu1 }
 0x307   :  { %1942 = vst [vmem:[#allocation15] sm:$0xff] %v1816_v30  ;;  %v1827_v60 = vadd.f32 %v2337_v52, %v3577_v22 }
 0x308   :  { %v1818_v5 = vpop.f32.mrf.mxu1 }
 0x309   :  { %1945 = vst [vmem:[#allocation15 + $0x18] sm:$0xff] %v1827_v60  ;;  %v1819_v15 = vadd.f32 %v3577_v22, %v1818_v5 }
 0x30a   :  { %v2340_v42 = vpop.f32.mrf.mxu1 }
 0x30b   :  { %1943 = vst [vmem:[#allocation15 + $0x8] sm:$0xff] %v1819_v15  ;;  %v1840_v36 = vadd.f32 %v2340_v42, %v3577_v22 }
 0x30c   :  { %v1831_v2 = vpop.f32.mrf.mxu1 }
 0x30d   :  { %1948 = vst [vmem:[#allocation15 + $0x30] sm:$0xff] %v1840_v36  ;;  %v1832_v25 = vadd.f32 %v3577_v22, %v1831_v2 }
 0x30e   :  { %v2341_v58 = vpop.f32.mrf.mxu1 }
 0x30f   :  { %1946 = vst [vmem:[#allocation15 + $0x20] sm:$0xff] %v1832_v25  ;;  %v1843_v63 = vadd.f32 %v2341_v58, %v3577_v22 }
 0x310   :  { %v1834_v47 = vpop.f32.mrf.mxu1 }
 0x311   :  { %1949 = vst [vmem:[#allocation15 + $0x38] sm:$0xff] %v1843_v63  ;;  %v1835_v14 = vadd.f32 %v3577_v22, %v1834_v47 }
 0x312   :  { %v2344_v50 = vpop.f32.mrf.mxu1 }
 0x313   :  { %1947 = vst [vmem:[#allocation15 + $0x28] sm:$0xff] %v1835_v14  ;;  %v1856_v37 = vadd.f32 %v2344_v50, %v3577_v22 }
 0x314   :  { %v1847_v53 = vpop.f32.mrf.mxu1 }
 0x315   :  { %1952 = vst [vmem:[#allocation15 + $0x50] sm:$0xff] %v1856_v37  ;;  %v1848_v29 = vadd.f32 %v3577_v22, %v1847_v53 }
 0x316   :  { %v2345_v33 = vpop.f32.mrf.mxu1 }
 0x317   :  { %1950 = vst [vmem:[#allocation15 + $0x40] sm:$0xff] %v1848_v29  ;;  %v1859_v13 = vadd.f32 %v2345_v33, %v3577_v22 }
 0x318   :  { %v1850_v56 = vpop.f32.mrf.mxu1 }
 0x319   :  { %1953 = vst [vmem:[#allocation15 + $0x58] sm:$0xff] %v1859_v13  ;;  %v1851_v28 = vadd.f32 %v3577_v22, %v1850_v56 }
 0x31a   :  { %v2348_v61 = vpop.f32.mrf.mxu1 }
 0x31b   :  { %1951 = vst [vmem:[#allocation15 + $0x48] sm:$0xff] %v1851_v28  ;;  %v1872_v7 = vadd.f32 %v2348_v61, %v3577_v22 }
 0x31c   :  { %v1863_v62 = vpop.f32.mrf.mxu1 }
 0x31d   :  { %1956 = vst [vmem:[#allocation15 + $0x70] sm:$0xff] %v1872_v7  ;;  %v1864_v20 = vadd.f32 %v3577_v22, %v1863_v62 }
 0x31e   :  { %v2349_v18 = vpop.f32.mrf.mxu1 }
 0x31f   :  { %1954 = vst [vmem:[#allocation15 + $0x60] sm:$0xff] %v1864_v20  ;;  %v1875_v43 = vadd.f32 %v2349_v18, %v3577_v22 }
 0x320   :  { %v1866_v3 = vpop.f32.mrf.mxu1 }
 0x321   :  { %1957 = vst [vmem:[#allocation15 + $0x78] sm:$0xff] %v1875_v43  ;;  %v1867_v35 = vadd.f32 %v3577_v22, %v1866_v3 }
 0x322   :  { %v2352_v59 = vpop.f32.mrf.mxu1 }
 0x323   :  { %1955 = vst [vmem:[#allocation15 + $0x68] sm:$0xff] %v1867_v35  ;;  %v1888_v0 = vadd.f32 %v2352_v59, %v3577_v22 }
 0x324   :  { %v1879_v17 = vpop.f32.mrf.mxu1 }
 0x325   :  { %1960 = vst [vmem:[#allocation15 + $0x90] sm:$0xff] %v1888_v0  ;;  %v1880_v11 = vadd.f32 %v3577_v22, %v1879_v17 }
 0x326   :  { %v2353_v27 = vpop.f32.mrf.mxu1 }
 0x327   :  { %1958 = vst [vmem:[#allocation15 + $0x80] sm:$0xff] %v1880_v11  ;;  %v1891_v44 = vadd.f32 %v2353_v27, %v3577_v22 }
 0x328   :  { %v1882_v57 = vpop.f32.mrf.mxu1 }
 0x329   :  { %1961 = vst [vmem:[#allocation15 + $0x98] sm:$0xff] %v1891_v44  ;;  %v1883_v6 = vadd.f32 %v3577_v22, %v1882_v57 }
 0x32a   :  { %v2356_v23 = vpop.f32.mrf.mxu1 }
 0x32b   :  { %1959 = vst [vmem:[#allocation15 + $0x88] sm:$0xff] %v1883_v6  ;;  %v1904_v39 = vadd.f32 %v2356_v23, %v3577_v22 }
 0x32c   :  { %v1895_v38 = vpop.f32.mrf.mxu1 }
 0x32d   :  { %1964 = vst [vmem:[#allocation15 + $0xb0] sm:$0xff] %v1904_v39  ;;  %v1896_v41 = vadd.f32 %v3577_v22, %v1895_v38 }
 0x32e   :  { %v2357_v24 = vpop.f32.mrf.mxu1 }
 0x32f   :  { %1962 = vst [vmem:[#allocation15 + $0xa0] sm:$0xff] %v1896_v41  ;;  %v1907_v19 = vadd.f32 %v2357_v24, %v3577_v22 }
 0x330   :  { %v1898_v34 = vpop.f32.mrf.mxu1 }
 0x331   :  { %1965 = vst [vmem:[#allocation15 + $0xb8] sm:$0xff] %v1907_v19  ;;  %v1899_v8 = vadd.f32 %v3577_v22, %v1898_v34 }
 0x332   :  { %v2360_v55 = vpop.f32.mrf.mxu1 }
 0x333   :  { %1963 = vst [vmem:[#allocation15 + $0xa8] sm:$0xff] %v1899_v8  ;;  %v1920_v46 = vadd.f32 %v2360_v55, %v3577_v22 }
 0x334   :  { %v1911_v10 = vpop.f32.mrf.mxu1 }
 0x335   :  { %1968 = vst [vmem:[#allocation15 + $0xd0] sm:$0xff] %v1920_v46  ;;  %v1912_v16 = vadd.f32 %v3577_v22, %v1911_v10 }
 0x336   :  { %v2361_v21 = vpop.f32.mrf.mxu1 }
 0x337   :  { %1966 = vst [vmem:[#allocation15 + $0xc0] sm:$0xff] %v1912_v16  ;;  %v1923_v48 = vadd.f32 %v2361_v21, %v3577_v22 }
 0x338   :  { %v1914_v51 = vpop.f32.mrf.mxu1 }
 0x339   :  { %1969 = vst [vmem:[#allocation15 + $0xd8] sm:$0xff] %v1923_v48  ;;  %v1915_v26 = vadd.f32 %v3577_v22, %v1914_v51 }
 0x33a   :  { %v2364_v9 = vpop.f32.mrf.mxu1 }
 0x33b   :  { %1967 = vst [vmem:[#allocation15 + $0xc8] sm:$0xff] %v1915_v26  ;;  %v1936_v1 = vadd.f32 %v2364_v9, %v3577_v22 }
 0x33c   :  { %v1927_v40 = vpop.f32.mrf.mxu1 }
 0x33d   :  { %1972 = vst [vmem:[#allocation15 + $0xf0] sm:$0xff] %v1936_v1  ;;  %v1928_v4 = vadd.f32 %v3577_v22, %v1927_v40 }
 0x33e   :  { %v2365_v12 = vpop.f32.mrf.mxu1 }
 0x33f   :  { %1970 = vst [vmem:[#allocation15 + $0xe0] sm:$0xff] %v1928_v4  ;;  %v1939_v31 = vadd.f32 %v2365_v12, %v3577_v22 }
 0x340   :  { %v1930_v49 = vpop.f32.mrf.mxu1 }
 0x341   :  { %1973 = vst [vmem:[#allocation15 + $0xf8] sm:$0xff] %v1939_v31  ;;  %v1931_v32 = vadd.f32 %v3577_v22, %v1930_v49 }
 0x343   :  { %1971 = vst [vmem:[#allocation15 + $0xe8] sm:$0xff] %v1931_v32 }
 0x344   :  { %2721 = shalt.err (!%p2718_p11)
}
 0x345   :  { %1985 = dma.vmem_to_hbm [thread:$0]  %s1980_s17, 4096, %s3628_s11, [#allocation5], %s2742_s22, %s2742_s22, %s2743_s23  }
 0x346   :  { %2738 = dma.done.wait [#allocation5], 4096  }
 0x347   :  { %2739 = vsyncadd [#allocation5], 4294963200 }
 0x348   :  { %1989 = vsyncpa [#allocation4], 1 }
 0x349   :  { %1990 = vsyncpa [#allocation7], 1 }
 0x34a   :  { %1991 = vsyncpa [#allocation10], 1 }
 0x34b   :  { %1992 = vsyncpa [#allocation13], 1 }
 0x34c   :  { %1993 = vsyncpa [#allocation5], 1 }

</bundles_post_ra>
